<compile_context>
chip_gen: v5e
topology: v5e:2x2
jax: 0.10.0
libtpu: 0.0.40
codegen_flags: <defaults>
</compile_context>

<pallas_src>
import functools

import jax
import jax.numpy as jnp
from jax.experimental import pallas as pl
from jax.experimental.pallas import tpu as pltpu

NUM_GROUPS = 32
EPS = 1e-6


def _round_up(x, m):
    return (x + m - 1) // m * m


def _largest_tile(n, preferred):
    """Largest preferred divisor of n (falls back to the full extent)."""
    for t in preferred:
        if t <= n and n % t == 0:
            return t
    return n


def _pick_parallel_tile(n, preferred, other_parallel=1):
    """Like _largest_tile, but prefers tiles that leave >= 2 parallel grid steps
    (so both v7x TensorCores get fed even at B=1)."""
    cands = [t for t in preferred if t <= n and n % t == 0] or [n]
    for t in cands:
        if other_parallel * (n // t) >= 2:
            return t
    return cands[-1]


def _vmem_budget_bytes():
    """Conservative per-pallas_call VMEM budget that fits every generation
    (v7x: 64 MiB physical per TensorCore; v5e/v6e: 128 MiB)."""
    cap = 64 * 1024 * 1024
    try:
        info = pltpu.get_tpu_info()
        cap = int(getattr(info, "vmem_capacity_bytes", cap)) or cap
    except Exception:
        pass
    return min(int(0.75 * cap), 48 * 1024 * 1024)


def _resident_attn_plan(b, n, cp, budget):
    """Pick a q tile for the VMEM-resident-KV attention path, or None if it
    cannot fit the budget (then the tiled-KV flash path is used)."""
    cands = [t for t in (512, 256, 128) if t <= n and n % t == 0] or [n]
    kv_bytes = 2 * 2 * n * cp * 2          # K + V blocks, bf16, 2x-buffered
    wp_bytes = 2 * cp * cp * 2             # proj weight, bf16, 2x-buffered
    fitting = []
    for tq in cands:
        per_q = (2 * tq * cp * (2 + 4 + 4)          # q (bf16) + x + out (f32), 2x-buffered
                 + 3 * tq * n * 4                   # score / exp temporaries (f32)
                 + 4 * tq * cp * 4)                 # misc f32 temporaries
        if kv_bytes + wp_bytes + per_q <= budget:
            fitting.append(tq)
    if not fitting:
        return None
    for tq in fitting:                               # prefer >= 2 parallel grid steps
        if b * (n // tq) >= 2:
            return tq
    return fitting[-1]


# ----------------- kernel 1: GroupNorm affine + q/k/v projections --------------------
def _qkv_kernel(x_ref, scale_ref, shift_ref, wq_ref, wk_ref, wv_ref,
                bq_ref, bk_ref, bv_ref, q_ref, k_ref, v_ref):
    # x_ref: (1, tn, Cp) f32; scale/shift: (1, 1, Cp) f32 (GroupNorm folded per-channel).
    xn = (x_ref[0] * scale_ref[0] + shift_ref[0]).astype(jnp.bfloat16)   # (tn, Cp)
    # Three narrow matmuls instead of one (tn, 3Cp)-wide one: identical MXU work,
    # 3x smaller live f32 intermediate, each fused with its bias + bf16 cast + store.
    q_ref[0] = (jnp.dot(xn, wq_ref[...], preferred_element_type=jnp.float32)
                + bq_ref[0]).astype(jnp.bfloat16)
    k_ref[0] = (jnp.dot(xn, wk_ref[...], preferred_element_type=jnp.float32)
                + bk_ref[0]).astype(jnp.bfloat16)
    v_ref[0] = (jnp.dot(xn, wv_ref[...], preferred_element_type=jnp.float32)
                + bv_ref[0]).astype(jnp.bfloat16)


# --------- kernel 2a (fast path): VMEM-resident K/V, single-pass softmax -------------
def _attn_resident_kernel(q_ref, k_ref, v_ref, x_ref, wp_ref, bp_ref, o_ref):
    # q: (1, tq, Cp) bf16; k/v: (1, N, Cp) bf16 resident for the whole batch entry
    # (grid-invariant block index -> DMA'd once per batch, never re-read per q tile).
    # The softmax scale is pre-folded into the q projection.
    q = q_ref[0]
    k = k_ref[0]
    v = v_ref[0]
    # q @ k^T with the transpose folded into the contraction (no XLU relayout).
    s = jax.lax.dot_general(q, k, (((1,), (1,)), ((), ())),
                            preferred_element_type=jnp.float32)           # (tq, N)
    m = jnp.max(s, axis=-1, keepdims=True)
    p = jnp.exp(s - m)
    l = jnp.sum(p, axis=-1, keepdims=True)
    attn = jnp.dot(p.astype(jnp.bfloat16), v,
                   preferred_element_type=jnp.float32) * pl.reciprocal(l, approx=True)
    proj = jnp.dot(attn.astype(jnp.bfloat16), wp_ref[...],
                   preferred_element_type=jnp.float32) + bp_ref[0]
    o_ref[0] = x_ref[0] + proj


# --------- kernel 2b (fallback): flash-style tiled-KV online softmax -----------------
def _attn_flash_kernel(q_ref, k_ref, v_ref, x_ref, wp_ref, bp_ref, o_ref,
                       m_sc, l_sc, acc_sc):
    ki = pl.program_id(2)

    @pl.when(ki == 0)
    def _():
        m_sc[...] = jnp.full(m_sc.shape, -jnp.inf, jnp.float32)
        l_sc[...] = jnp.zeros(l_sc.shape, jnp.float32)
        acc_sc[...] = jnp.zeros(acc_sc.shape, jnp.float32)

    q = q_ref[0]                      # (tq,  Cp) bf16 (already carries the 1/sqrt(c))
    k = k_ref[0]                      # (tkv, Cp) bf16
    v = v_ref[0]                      # (tkv, Cp) bf16

    s = jax.lax.dot_general(q, k, (((1,), (1,)), ((), ())),
                            preferred_element_type=jnp.float32)           # (tq, tkv)

    m_prev = m_sc[...]
    m_new = jnp.maximum(m_prev, jnp.max(s, axis=-1, keepdims=True))
    alpha = jnp.exp(m_prev - m_new)
    p = jnp.exp(s - m_new)
    l_sc[...] = alpha * l_sc[...] + jnp.sum(p, axis=-1, keepdims=True)
    acc_sc[...] = alpha * acc_sc[...] + jnp.dot(
        p.astype(jnp.bfloat16), v, preferred_element_type=jnp.float32)
    m_sc[...] = m_new

    @pl.when(ki == pl.num_programs(2) - 1)
    def _():
        attn = acc_sc[...] * pl.reciprocal(l_sc[...], approx=True)
        proj = jnp.dot(attn.astype(jnp.bfloat16), wp_ref[...],
                       preferred_element_type=jnp.float32) + bp_ref[0]
        o_ref[0] = x_ref[0] + proj


def attn_block_pallas(x_nchw, params, *, tn=None, tq=None, tkv=None, force_flash=False):
    """x_nchw: (B, C, H, W) float32.  Returns (B, C, H, W) float32."""
    b, c, h, w = x_nchw.shape
    n = h * w
    assert c % NUM_GROUPS == 0
    x_nchw = x_nchw.astype(jnp.float32)

    # --- GroupNorm statistics: single fused pass (sum & sum of squares) -------------
    gs = c // NUM_GROUPS
    xr = x_nchw.reshape(b, NUM_GROUPS, gs * n)
    cnt = float(gs * n)
    s1 = jnp.sum(xr, axis=-1)
    s2 = jnp.sum(xr * xr, axis=-1)
    mean_g = s1 / cnt
    var_g = jnp.maximum(s2 / cnt - mean_g * mean_g, 0.0)
    inv_g = jax.lax.rsqrt(var_g + EPS)
    mean_c = jnp.repeat(mean_g, gs, axis=1)                      # (B, C)
    inv_c = jnp.repeat(inv_g, gs, axis=1)
    scale_c = inv_c * params["gamma"][None, :]
    shift_c = params["beta"][None, :] - mean_c * scale_c

    # NCHW -> (B, N, C) channels-last for lane-dense MXU matmuls.
    # TODO(synk): the surrounding model could hand us NHWC / accept (B, C, N) output
    # directly and save these two XLA layout round-trips (pure layout plumbing).
    x = jnp.transpose(x_nchw.reshape(b, c, n), (0, 2, 1))

    # Pad channels to a lane-dense multiple of 128 (padded channels stay exactly zero
    # end-to-end: zero scale/shift, zero weight rows/cols, zero bias, zero residual).
    cp = _round_up(c, 128)
    pc = cp - c
    if pc:
        x = jnp.pad(x, ((0, 0), (0, 0), (0, pc)))
        scale_c = jnp.pad(scale_c, ((0, 0), (0, pc)))
        shift_c = jnp.pad(shift_c, ((0, 0), (0, pc)))
    scale_c = scale_c.reshape(b, 1, cp)
    shift_c = shift_c.reshape(b, 1, cp)

    attn_scale = float(c) ** (-0.5)

    def pad_wt(wgt, mult=1.0):   # conv weight (Cout, Cin) -> transposed + padded (Cp, Cp)
        return jnp.pad(wgt.T * mult, ((0, pc), (0, pc))).astype(jnp.bfloat16)

    def pad_b(bias, mult=1.0):
        return jnp.pad(bias * mult, ((0, pc),)).reshape(1, 1, cp).astype(jnp.float32)

    # Softmax scale folded into the q projection (removes a per-step VPU multiply).
    wq_p = pad_wt(params["wq"], attn_scale)
    wk_p = pad_wt(params["wk"])
    wv_p = pad_wt(params["wv"])
    wp_p = pad_wt(params["wp"])
    bq_p = pad_b(params["bq"], attn_scale)
    bk_p = pad_b(params["bk"])
    bv_p = pad_b(params["bv"])
    bp_p = pad_b(params["bp"])

    budget = _vmem_budget_bytes()

    # ------------------- kernel 1: normalized x -> q, k, v (bf16) -------------------
    tn = tn or _pick_parallel_tile(n, (512, 256, 128), other_parallel=b)
    assert n % tn == 0
    q_bf, k_bf, v_bf = pl.pallas_call(
        _qkv_kernel,
        out_shape=(jax.ShapeDtypeStruct((b, n, cp), jnp.bfloat16),) * 3,
        grid=(b, n // tn),
        in_specs=[
            pl.BlockSpec((1, tn, cp), lambda bi, ni: (bi, ni, 0)),
            pl.BlockSpec((1, 1, cp), lambda bi, ni: (bi, 0, 0)),
            pl.BlockSpec((1, 1, cp), lambda bi, ni: (bi, 0, 0)),
            pl.BlockSpec((cp, cp), lambda bi, ni: (0, 0)),
            pl.BlockSpec((cp, cp), lambda bi, ni: (0, 0)),
            pl.BlockSpec((cp, cp), lambda bi, ni: (0, 0)),
            pl.BlockSpec((1, 1, cp), lambda bi, ni: (0, 0, 0)),
            pl.BlockSpec((1, 1, cp), lambda bi, ni: (0, 0, 0)),
            pl.BlockSpec((1, 1, cp), lambda bi, ni: (0, 0, 0)),
        ],
        out_specs=(pl.BlockSpec((1, tn, cp), lambda bi, ni: (bi, ni, 0)),) * 3,
        compiler_params=pltpu.CompilerParams(
            dimension_semantics=("parallel", "parallel"),
            # explicit limit: above v5e's 16 MiB scoped default, below v7x's 64 MiB.
            vmem_limit_bytes=min(budget, 32 * 1024 * 1024)),
    )(x, scale_c, shift_c, wq_p, wk_p, wv_p, bq_p, bk_p, bv_p)

    # ------------------- kernel 2: attention + proj_out + residual ------------------
    use_flash = force_flash or (tkv is not None)
    resident_tq = None
    if not use_flash:
        resident_tq = _resident_attn_plan(b, n, cp, budget)
        use_flash = resident_tq is None

    if not use_flash:
        tq_r = tq or resident_tq
        assert n % tq_r == 0
        out = pl.pallas_call(
            _attn_resident_kernel,
            out_shape=jax.ShapeDtypeStruct((b, n, cp), jnp.float32),
            grid=(b, n // tq_r),
            in_specs=[
                pl.BlockSpec((1, tq_r, cp), lambda bi, qi: (bi, qi, 0)),   # q
                pl.BlockSpec((1, n, cp), lambda bi, qi: (bi, 0, 0)),       # k (resident)
                pl.BlockSpec((1, n, cp), lambda bi, qi: (bi, 0, 0)),       # v (resident)
                pl.BlockSpec((1, tq_r, cp), lambda bi, qi: (bi, qi, 0)),   # x (residual)
                pl.BlockSpec((cp, cp), lambda bi, qi: (0, 0)),             # proj weight
                pl.BlockSpec((1, 1, cp), lambda bi, qi: (0, 0, 0)),        # proj bias
            ],
            out_specs=pl.BlockSpec((1, tq_r, cp), lambda bi, qi: (bi, qi, 0)),
            compiler_params=pltpu.CompilerParams(
                dimension_semantics=("parallel", "parallel"),
                vmem_limit_bytes=budget),
        )(q_bf, k_bf, v_bf, x, wp_p, bp_p)
    else:
        # Tiled-KV flash fallback (online softmax, kv reduction axis innermost).
        tq_f = tq or _pick_parallel_tile(n, (512, 256, 128), other_parallel=b)
        tkv_f = tkv or _largest_tile(n, (512, 256, 128))
        assert n % tq_f == 0 and n % tkv_f == 0
        out = pl.pallas_call(
            _attn_flash_kernel,
            out_shape=jax.ShapeDtypeStruct((b, n, cp), jnp.float32),
            grid=(b, n // tq_f, n // tkv_f),
            in_specs=[
                pl.BlockSpec((1, tq_f, cp), lambda bi, qi, ki: (bi, qi, 0)),    # q
                pl.BlockSpec((1, tkv_f, cp), lambda bi, qi, ki: (bi, ki, 0)),   # k
                pl.BlockSpec((1, tkv_f, cp), lambda bi, qi, ki: (bi, ki, 0)),   # v
                pl.BlockSpec((1, tq_f, cp), lambda bi, qi, ki: (bi, qi, 0)),    # x
                pl.BlockSpec((cp, cp), lambda bi, qi, ki: (0, 0)),              # wp
                pl.BlockSpec((1, 1, cp), lambda bi, qi, ki: (0, 0, 0)),         # bp
            ],
            out_specs=pl.BlockSpec((1, tq_f, cp), lambda bi, qi, ki: (bi, qi, 0)),
            scratch_shapes=[
                pltpu.VMEM((tq_f, 1), jnp.float32),     # running max
                pltpu.VMEM((tq_f, 1), jnp.float32),     # running denominator
                pltpu.VMEM((tq_f, cp), jnp.float32),    # output accumulator
            ],
            compiler_params=pltpu.CompilerParams(
                dimension_semantics=("parallel", "parallel", "arbitrary"),
                vmem_limit_bytes=budget),
        )(q_bf, k_bf, v_bf, x, wp_p, bp_p)

    # strip channel padding, (B, N, C) -> NCHW
    out = out[:, :, :c]
    return jnp.transpose(out, (0, 2, 1)).reshape(b, c, h, w)


def attn_block_reference(x, params):
    """Pure-JAX NCHW reference mirroring the PyTorch forward (for validation)."""
    b, c, h, w = x.shape
    gs = c // NUM_GROUPS
    xr = x.reshape(b, NUM_GROUPS, gs, h, w)
    mean = xr.mean(axis=(2, 3, 4), keepdims=True)
    var = ((xr - mean) ** 2).mean(axis=(2, 3, 4), keepdims=True)
    hn = ((xr - mean) / jnp.sqrt(var + EPS)).reshape(b, c, h, w)
    hn = hn * params["gamma"][None, :, None, None] + params["beta"][None, :, None, None]

    def conv1x1(t, wgt, bias):
        return jnp.einsum("bchw,oc->bohw", t, wgt) + bias[None, :, None, None]

    q = conv1x1(hn, params["wq"], params["bq"]).reshape(b, c, h * w)
    k = conv1x1(hn, params["wk"], params["bk"]).reshape(b, c, h * w)
    v = conv1x1(hn, params["wv"], params["bv"]).reshape(b, c, h * w)
    q = jnp.transpose(q, (0, 2, 1))                       # (B, N, C)
    w_ = jnp.einsum("bnc,bcm->bnm", q, k) * (float(c) ** -0.5)
    w_ = jax.nn.softmax(w_, axis=2)
    h_ = jnp.einsum("bcm,bnm->bcn", v, w_).reshape(b, c, h, w)
    h_ = conv1x1(h_, params["wp"], params["bp"])
    return x + h_


def make_params(key, c):
    keys = jax.random.split(key, 8)
    scale = 1.0 / jnp.sqrt(c)
    return {
        "wq": jax.random.normal(keys[0], (c, c), jnp.float32) * scale,
        "wk": jax.random.normal(keys[1], (c, c), jnp.float32) * scale,
        "wv": jax.random.normal(keys[2], (c, c), jnp.float32) * scale,
        "wp": jax.random.normal(keys[3], (c, c), jnp.float32) * scale,
        "bq": jax.random.normal(keys[4], (c,), jnp.float32) * 0.1,
        "bk": jax.random.normal(keys[5], (c,), jnp.float32) * 0.1,
        "bv": jax.random.normal(keys[6], (c,), jnp.float32) * 0.1,
        "bp": jax.random.normal(keys[7], (c,), jnp.float32) * 0.1,
        "gamma": jnp.ones((c,), jnp.float32),
        "beta": jnp.zeros((c,), jnp.float32),
    }


if __name__ == "__main__":
    # GroupNorm(num_groups=32) requires C % 32 == 0; C=64 also exercises the lane padding.
    B, C, H, W = 2, 64, 16, 16
    key = jax.random.PRNGKey(0)
    kx, kp = jax.random.split(key)
    x = jax.random.normal(kx, (B, C, H, W), jnp.float32)
    params = make_params(kp, C)

    ref = jax.block_until_ready(attn_block_reference(x, params))

    # Fast path: VMEM-resident K/V, single-pass softmax (default tile selection).
    out_fast = jax.block_until_ready(attn_block_pallas(x, params))
    assert out_fast.shape == (B, C, H, W)
    err_fast = float(jnp.max(jnp.abs(out_fast - ref)))
    # bf16 MXU inputs with f32 accumulation + approx reciprocal -> loose tolerance.
    assert err_fast < 1e-1, err_fast

    # Fallback path: flash-style tiled-KV online softmax, small tiles so multiple
    # kv accumulation steps actually run (N=256 -> 2 q-tiles x 2 kv-tiles).
    out_flash = jax.block_until_ready(
        attn_block_pallas(x, params, tn=128, tq=128, tkv=128, force_flash=True))
    err_flash = float(jnp.max(jnp.abs(out_flash - ref)))
    assert err_flash < 1e-1, err_flash

    print("KERNEL_OK")
</pallas_src>

<mosaic_0001>
module attributes {stable_mosaic.version = 11 : i64} {
  func.func @_qkv_kernel(%arg0: i32, %arg1: i32, %arg2: memref<1x256x128xf32, #tpu.memory_space<vmem>>, %arg3: memref<1x1x128xf32, #tpu.memory_space<vmem>>, %arg4: memref<1x1x128xf32, #tpu.memory_space<vmem>>, %arg5: memref<128x128xbf16, #tpu.memory_space<vmem>>, %arg6: memref<128x128xbf16, #tpu.memory_space<vmem>>, %arg7: memref<128x128xbf16, #tpu.memory_space<vmem>>, %arg8: memref<1x1x128xf32, #tpu.memory_space<vmem>>, %arg9: memref<1x1x128xf32, #tpu.memory_space<vmem>>, %arg10: memref<1x1x128xf32, #tpu.memory_space<vmem>>, %arg11: memref<1x256x128xbf16, #tpu.memory_space<vmem>>, %arg12: memref<1x256x128xbf16, #tpu.memory_space<vmem>>, %arg13: memref<1x256x128xbf16, #tpu.memory_space<vmem>>) attributes {dimension_semantics = [#tpu.dimension_semantics<parallel>, #tpu.dimension_semantics<parallel>], iteration_bounds = array<i64: 2, 1>, scalar_prefetch = 0 : i64, scratch_operands = 0 : i64, tpu.core_type = #tpu.core_type<tc>, window_params = [{transform_indices = @transform_0, window_bounds = array<i64: 1, 256, 128>}, {transform_indices = @transform_1, window_bounds = array<i64: 1, 1, 128>}, {transform_indices = @transform_2, window_bounds = array<i64: 1, 1, 128>}, {pipeline_mode = #tpu.pipeline_mode<synchronous>, transform_indices = @transform_3, window_bounds = array<i64: 128, 128>}, {pipeline_mode = #tpu.pipeline_mode<synchronous>, transform_indices = @transform_4, window_bounds = array<i64: 128, 128>}, {pipeline_mode = #tpu.pipeline_mode<synchronous>, transform_indices = @transform_5, window_bounds = array<i64: 128, 128>}, {pipeline_mode = #tpu.pipeline_mode<synchronous>, transform_indices = @transform_6, window_bounds = array<i64: 1, 1, 128>}, {pipeline_mode = #tpu.pipeline_mode<synchronous>, transform_indices = @transform_7, window_bounds = array<i64: 1, 1, 128>}, {pipeline_mode = #tpu.pipeline_mode<synchronous>, transform_indices = @transform_8, window_bounds = array<i64: 1, 1, 128>}, {transform_indices = @transform_9, window_bounds = array<i64: 1, 256, 128>}, {transform_indices = @transform_10, window_bounds = array<i64: 1, 256, 128>}, {transform_indices = @transform_11, window_bounds = array<i64: 1, 256, 128>}]} {
    %c0 = arith.constant 0 : index
    %c0_0 = arith.constant 0 : index
    %c0_1 = arith.constant 0 : index
    %0 = vector.load %arg2[%c0, %c0_0, %c0_1] : memref<1x256x128xf32, #tpu.memory_space<vmem>>, vector<1x256x128xf32>
    %1 = vector.shape_cast %0 : vector<1x256x128xf32> to vector<256x128xf32>
    %c0_2 = arith.constant 0 : index
    %c0_3 = arith.constant 0 : index
    %c0_4 = arith.constant 0 : index
    %2 = vector.load %arg3[%c0_2, %c0_3, %c0_4] : memref<1x1x128xf32, #tpu.memory_space<vmem>>, vector<1x1x128xf32>
    %3 = vector.shape_cast %2 : vector<1x1x128xf32> to vector<1x128xf32>
    %4 = vector.broadcast %3 : vector<1x128xf32> to vector<256x128xf32>
    %5 = arith.mulf %1, %4 : vector<256x128xf32>
    %c0_5 = arith.constant 0 : index
    %c0_6 = arith.constant 0 : index
    %c0_7 = arith.constant 0 : index
    %6 = vector.load %arg4[%c0_5, %c0_6, %c0_7] : memref<1x1x128xf32, #tpu.memory_space<vmem>>, vector<1x1x128xf32>
    %7 = vector.shape_cast %6 : vector<1x1x128xf32> to vector<1x128xf32>
    %8 = vector.broadcast %7 : vector<1x128xf32> to vector<256x128xf32>
    %9 = arith.addf %5, %8 : vector<256x128xf32>
    %10 = arith.truncf %9 : vector<256x128xf32> to vector<256x128xbf16>
    %c0_8 = arith.constant 0 : index
    %c0_9 = arith.constant 0 : index
    %11 = vector.load %arg5[%c0_8, %c0_9] : memref<128x128xbf16, #tpu.memory_space<vmem>>, vector<128x128xbf16>
    %cst = arith.constant dense<0.000000e+00> : vector<256x128xf32>
    %12 = tpu.matmul %10, %11, %cst {dimension_numbers = #tpu.dot_dimension_numbers<[1], [0], [0], [1], [0, 0, 1, 1], [], []>} : vector<256x128xbf16>, vector<128x128xbf16>, vector<256x128xf32> -> vector<256x128xf32>
    %c0_10 = arith.constant 0 : index
    %c0_11 = arith.constant 0 : index
    %c0_12 = arith.constant 0 : index
    %13 = vector.load %arg8[%c0_10, %c0_11, %c0_12] : memref<1x1x128xf32, #tpu.memory_space<vmem>>, vector<1x1x128xf32>
    %14 = vector.shape_cast %13 : vector<1x1x128xf32> to vector<1x128xf32>
    %15 = vector.broadcast %14 : vector<1x128xf32> to vector<256x128xf32>
    %16 = arith.addf %12, %15 : vector<256x128xf32>
    %17 = arith.truncf %16 : vector<256x128xf32> to vector<256x128xbf16>
    %c0_13 = arith.constant 0 : index
    %c0_14 = arith.constant 0 : index
    %c0_15 = arith.constant 0 : index
    %18 = vector.load %arg11[%c0_13, %c0_14, %c0_15] : memref<1x256x128xbf16, #tpu.memory_space<vmem>>, vector<1x256x128xbf16>
    %19 = vector.shape_cast %18 : vector<1x256x128xbf16> to vector<256x128xbf16>
    %20 = vector.shape_cast %17 : vector<256x128xbf16> to vector<1x256x128xbf16>
    tpu.vector_store %arg11[%c0_13, %c0_14, %c0_15], %20 {strides = array<i32>} : memref<1x256x128xbf16, #tpu.memory_space<vmem>>, vector<1x256x128xbf16>,
    %c0_16 = arith.constant 0 : index
    %c0_17 = arith.constant 0 : index
    %21 = vector.load %arg6[%c0_16, %c0_17] : memref<128x128xbf16, #tpu.memory_space<vmem>>, vector<128x128xbf16>
    %cst_18 = arith.constant dense<0.000000e+00> : vector<256x128xf32>
    %22 = tpu.matmul %10, %21, %cst_18 {dimension_numbers = #tpu.dot_dimension_numbers<[1], [0], [0], [1], [0, 0, 1, 1], [], []>} : vector<256x128xbf16>, vector<128x128xbf16>, vector<256x128xf32> -> vector<256x128xf32>
    %c0_19 = arith.constant 0 : index
    %c0_20 = arith.constant 0 : index
    %c0_21 = arith.constant 0 : index
    %23 = vector.load %arg9[%c0_19, %c0_20, %c0_21] : memref<1x1x128xf32, #tpu.memory_space<vmem>>, vector<1x1x128xf32>
    %24 = vector.shape_cast %23 : vector<1x1x128xf32> to vector<1x128xf32>
    %25 = vector.broadcast %24 : vector<1x128xf32> to vector<256x128xf32>
    %26 = arith.addf %22, %25 : vector<256x128xf32>
    %27 = arith.truncf %26 : vector<256x128xf32> to vector<256x128xbf16>
    %c0_22 = arith.constant 0 : index
    %c0_23 = arith.constant 0 : index
    %c0_24 = arith.constant 0 : index
    %28 = vector.load %arg12[%c0_22, %c0_23, %c0_24] : memref<1x256x128xbf16, #tpu.memory_space<vmem>>, vector<1x256x128xbf16>
    %29 = vector.shape_cast %28 : vector<1x256x128xbf16> to vector<256x128xbf16>
    %30 = vector.shape_cast %27 : vector<256x128xbf16> to vector<1x256x128xbf16>
    tpu.vector_store %arg12[%c0_22, %c0_23, %c0_24], %30 {strides = array<i32>} : memref<1x256x128xbf16, #tpu.memory_space<vmem>>, vector<1x256x128xbf16>,
    %c0_25 = arith.constant 0 : index
    %c0_26 = arith.constant 0 : index
    %31 = vector.load %arg7[%c0_25, %c0_26] : memref<128x128xbf16, #tpu.memory_space<vmem>>, vector<128x128xbf16>
    %cst_27 = arith.constant dense<0.000000e+00> : vector<256x128xf32>
    %32 = tpu.matmul %10, %31, %cst_27 {dimension_numbers = #tpu.dot_dimension_numbers<[1], [0], [0], [1], [0, 0, 1, 1], [], []>} : vector<256x128xbf16>, vector<128x128xbf16>, vector<256x128xf32> -> vector<256x128xf32>
    %c0_28 = arith.constant 0 : index
    %c0_29 = arith.constant 0 : index
    %c0_30 = arith.constant 0 : index
    %33 = vector.load %arg10[%c0_28, %c0_29, %c0_30] : memref<1x1x128xf32, #tpu.memory_space<vmem>>, vector<1x1x128xf32>
    %34 = vector.shape_cast %33 : vector<1x1x128xf32> to vector<1x128xf32>
    %35 = vector.broadcast %34 : vector<1x128xf32> to vector<256x128xf32>
    %36 = arith.addf %32, %35 : vector<256x128xf32>
    %37 = arith.truncf %36 : vector<256x128xf32> to vector<256x128xbf16>
    %c0_31 = arith.constant 0 : index
    %c0_32 = arith.constant 0 : index
    %c0_33 = arith.constant 0 : index
    %38 = vector.load %arg13[%c0_31, %c0_32, %c0_33] : memref<1x256x128xbf16, #tpu.memory_space<vmem>>, vector<1x256x128xbf16>
    %39 = vector.shape_cast %38 : vector<1x256x128xbf16> to vector<256x128xbf16>
    %40 = vector.shape_cast %37 : vector<256x128xbf16> to vector<1x256x128xbf16>
    tpu.vector_store %arg13[%c0_31, %c0_32, %c0_33], %40 {strides = array<i32>} : memref<1x256x128xbf16, #tpu.memory_space<vmem>>, vector<1x256x128xbf16>,
    return
  }
  func.func @transform_0(%arg0: i32, %arg1: i32) -> (i32, i32, i32) {
    %c0_i32 = arith.constant 0 : i32
    %c0_i32_0 = arith.constant 0 : i32
    return %arg0, %arg1, %c0_i32 : i32, i32, i32
  }
  func.func @transform_1(%arg0: i32, %arg1: i32) -> (i32, i32, i32) {
    %c0_i32 = arith.constant 0 : i32
    %c0_i32_0 = arith.constant 0 : i32
    %c0_i32_1 = arith.constant 0 : i32
    return %arg0, %c0_i32, %c0_i32_0 : i32, i32, i32
  }
  func.func @transform_2(%arg0: i32, %arg1: i32) -> (i32, i32, i32) {
    %c0_i32 = arith.constant 0 : i32
    %c0_i32_0 = arith.constant 0 : i32
    %c0_i32_1 = arith.constant 0 : i32
    return %arg0, %c0_i32, %c0_i32_0 : i32, i32, i32
  }
  func.func @transform_3(%arg0: i32, %arg1: i32) -> (i32, i32) {
    %c0_i32 = arith.constant 0 : i32
    %c0_i32_0 = arith.constant 0 : i32
    %c0_i32_1 = arith.constant 0 : i32
    return %c0_i32, %c0_i32_0 : i32, i32
  }
  func.func @transform_4(%arg0: i32, %arg1: i32) -> (i32, i32) {
    %c0_i32 = arith.constant 0 : i32
    %c0_i32_0 = arith.constant 0 : i32
    %c0_i32_1 = arith.constant 0 : i32
    return %c0_i32, %c0_i32_0 : i32, i32
  }
  func.func @transform_5(%arg0: i32, %arg1: i32) -> (i32, i32) {
    %c0_i32 = arith.constant 0 : i32
    %c0_i32_0 = arith.constant 0 : i32
    %c0_i32_1 = arith.constant 0 : i32
    return %c0_i32, %c0_i32_0 : i32, i32
  }
  func.func @transform_6(%arg0: i32, %arg1: i32) -> (i32, i32, i32) {
    %c0_i32 = arith.constant 0 : i32
    %c0_i32_0 = arith.constant 0 : i32
    %c0_i32_1 = arith.constant 0 : i32
    %c0_i32_2 = arith.constant 0 : i32
    return %c0_i32, %c0_i32_0, %c0_i32_1 : i32, i32, i32
  }
  func.func @transform_7(%arg0: i32, %arg1: i32) -> (i32, i32, i32) {
    %c0_i32 = arith.constant 0 : i32
    %c0_i32_0 = arith.constant 0 : i32
    %c0_i32_1 = arith.constant 0 : i32
    %c0_i32_2 = arith.constant 0 : i32
    return %c0_i32, %c0_i32_0, %c0_i32_1 : i32, i32, i32
  }
  func.func @transform_8(%arg0: i32, %arg1: i32) -> (i32, i32, i32) {
    %c0_i32 = arith.constant 0 : i32
    %c0_i32_0 = arith.constant 0 : i32
    %c0_i32_1 = arith.constant 0 : i32
    %c0_i32_2 = arith.constant 0 : i32
    return %c0_i32, %c0_i32_0, %c0_i32_1 : i32, i32, i32
  }
  func.func @transform_9(%arg0: i32, %arg1: i32) -> (i32, i32, i32) {
    %c0_i32 = arith.constant 0 : i32
    %c0_i32_0 = arith.constant 0 : i32
    return %arg0, %arg1, %c0_i32 : i32, i32, i32
  }
  func.func @transform_10(%arg0: i32, %arg1: i32) -> (i32, i32, i32) {
    %c0_i32 = arith.constant 0 : i32
    %c0_i32_0 = arith.constant 0 : i32
    return %arg0, %arg1, %c0_i32 : i32, i32, i32
  }
  func.func @transform_11(%arg0: i32, %arg1: i32) -> (i32, i32, i32) {
    %c0_i32 = arith.constant 0 : i32
    %c0_i32_0 = arith.constant 0 : i32
    return %arg0, %arg1, %c0_i32 : i32, i32, i32
  }
}

</mosaic_0001>

<bundles_post_ra>
// kernel: tpu_custom_call.1
= control target key start
LH: loop header
LB: loop body
LE: loop exit
PB: predicated region body
PF: predicated region fallthrough
CT: control target
= control target key end

     0   :  { %s3254_s0 = inlined_call_operand.hbm [shape: f32[2,256,128], index: 0, kind: input, shape index: {}]   ;;  %s3255_s1 = inlined_call_operand.hbm [shape: f32[2,1,128], index: 1, kind: input, shape index: {}]   ;;  %s3256_s2 = inlined_call_operand.hbm [shape: f32[2,1,128], index: 2, kind: input, shape index: {}]   ;;  %s3257_s3 = inlined_call_operand.hbm [shape: bf16[128,128], index: 3, kind: input, shape index: {}]   ;;  %s3258_s4 = inlined_call_operand.hbm [shape: bf16[128,128], index: 4, kind: input, shape index: {}]   ;;  %s3259_s5 = inlined_call_operand.hbm [shape: bf16[128,128], index: 5, kind: input, shape index: {}]   ;;  %s3260_s6 = inlined_call_operand.vmem [shape: f32[1,1,128], index: 6, kind: input, shape index: {}]   ;;  %s3261_s7 = inlined_call_operand.vmem [shape: f32[1,1,128], index: 7, kind: input, shape index: {}]   ;;  %s3262_s8 = inlined_call_operand.vmem [shape: f32[1,1,128], index: 8, kind: input, shape index: {}]   ;;  %s3263_s9 = inlined_call_operand.hbm [shape: bf16[2,256,128], index: 9, kind: output, shape index: {0}]   ;;  %s3264_s10 = inlined_call_operand.hbm [shape: bf16[2,256,128], index: 10, kind: output, shape index: {1}]   ;;  %s3265_s11 = inlined_call_operand.hbm [shape: bf16[2,256,128], index: 11, kind: output, shape index: {2}]  }
   0x1   :  { %3282 = sst [smem:[#allocation30_spill]] %s3255_s1 }
   0x2   :  { %3283 = sst [smem:[#allocation31_spill]] %s3257_s3 }
   0x3   :  { %3284 = sst [smem:[#allocation32_spill]] %s3258_s4 }
   0x4   :  { %3285 = sst [smem:[#allocation33_spill]] %s3259_s5 }
   0x5   :  { %3286 = sst [smem:[#allocation34_spill]] %s3263_s9 }
   0x6   :  { %3287 = sst [smem:[#allocation35_spill]] %s3264_s10 }
   0x7   :  { %3288 = sst [smem:[#allocation36_spill]] %s3265_s11 }
   0x8   :  { %17 = vsyncpa [#allocation3], 0 }
   0x9   :  { %19 = vsyncpa [#allocation3 + $0x1], 0 }
   0xa   :  { %20 = vsyncpa [#allocation6], 0 }
   0xb   :  { %22 = vsyncpa [#allocation6 + $0x1], 0 }
   0xc   :  { %23 = vsyncpa [#allocation9], 0 }
   0xd   :  { %24 = vsyncpa [#allocation12], 0 }
   0xe   :  { %25 = vsyncpa [#allocation4], 0 }
   0xf   :  { %27 = vsyncpa [#allocation4 + $0x1], 0 }
  0x10   :  { %28 = vsyncpa [#allocation15], 0 }
  0x11   :  { %30 = vsyncpa [#allocation15 + $0x1], 0  ;;  %s2628_s17 = smov 0   ;;  %s2630_s18 = smov 0  }
  0x12   :  { %s2632_s19 = smov 0   ;;  %s2634_s20 = smov 0  }
  0x13   :  { %s2636_s21 = smov 0   ;;  %s2638_s22 = smov 0  }
  0x14 LB: > { %3289 = sst [smem:[#allocation23_spill]] %s2537_s17  ;;  %s2659_s23 = sadd.s32 4294967295, %s2557_s22   ;;  %s2557_s22 = sphi %s2638_s22, %s36_s22   ;;  %s2553_s21 = sphi %s2636_s21, %s3323_s21   ;;  %s2549_s20 = sphi %s2634_s20, %s3322_s20   ;;  %s2545_s19 = sphi %s2632_s19, %s3318_s19   ;;  %s2541_s18 = sphi %s2630_s18, %s3321_s18   ;;  %s2537_s17 = sphi %s2628_s17, %s3320_s17  }
  0x15   : > { %3290 = sst [smem:[#allocation24_spill]] %s2545_s19  ;;  %p1639_p0 = scmp.ge.s32.totalorder %s2557_s22, 1 }
  0x16   : > { %3291 = sst [smem:[#allocation25_spill]] %s2557_s22  ;;  %p71_p1 = scmp.eq.s32.totalorder %s2659_s23, 0 }
  0x17   : > { %p343_p2 = scmp.lt.s32.totalorder %s2557_s22, 3  ;;  %s3292_s3 = sld [smem:[#allocation31_spill]] }
  0x18   : > { %s2559_s28 = smov [#allocation8]   ;;  %s3266_s12 = smov 64  }
  0x19   : > { %p2667_p3 = pnand %p1639_p0, %p343_p2  ;;  %s356_s29 = sshll.u32 %s2559_s28, 4  ;;  %s357_s29 = int_to_ptr.vmem [resolvable:$true] %s356_s29 }
  0x1a   : > { %s3268_s13 = smov 4   ;;  %s3270_s14 = sadd.s32 4294967294, %s2557_s22  }
  0x1b   : > { %p2123_p4 = pneg %p2667_p3  ;;  %s48_s15 = sadd.s32 1, %s2553_s21 }
  0x1c   : > { %s57_s16 = sadd.s32 1, %s2545_s19  ;;  %p50_p7 = scmp.ge.s32.totalorder %s48_s15, 2 }
  0x1d   : > { %s354_s26 = sshll.u32 %s3292_s3, 4  ;;  %p2675_p5 = pnand %p2123_p4, %p71_p1  ;;  %s355_s26 = int_to_ptr.hbm [resolvable:$true] %s354_s26 }
  0x1e   : > { %p64_p8 = scmp.ne.s32.totalorder %s2545_s19, %s2541_s18  ;;  %p65_p9 = scmp.eq.s32.totalorder %s2557_s22, 0 }
  0x1f   : > { %2126 = dma.hbm_to_vmem [thread:$0]  (!%p2675_p5), %s355_s26, 1024, %s357_s29, [#allocation9], %s3266_s12, %s3266_s12, %s3268_s13  }
  0x20   : > { %p70_p10 = scmp.ne.s32.totalorder %s2541_s18, %s2537_s17  ;;  %s3325_s15 = smov (%p50_p7, %s48_s15), 0 }
  0x21   : > { %3295 = sst [smem:[#allocation26_spill]] %s3325_s15  ;;  %p66_p11 = por %p65_p9, %p64_p8 }
  0x22   : > { %p2697_p12 = por %p71_p1, %p70_p10  ;;  %s52_s25 = ssub.s32 %s2553_s21, %s3325_s15 }
  0x23   : > { %p274_p13 = scmp.eq.s32.totalorder %s2659_s23, 1  ;;  %p55_p0 = scmp.eq.s32.totalorder %s52_s25, 0 }
  0x24   : > { %p280_p2 = scmp.eq.s32.totalorder %s3270_s14, 1  ;;  %p2156_p6 = scmp.lt.s32.totalorder %s2557_s22, 2 }
  0x25   : > { %p2706_p4 = por %p274_p13, %p64_p8  ;;  %s2719_s12 = sand.u32 1, %s2545_s19  }
  0x26   : > { %s2712_s28 = scalar_select %p55_p0, %s2545_s19, %s57_s16  }
  0x27   : > { %s3297_s26 = scalar_select %p2706_p4, 1, 0 }
  0x28   : > { %3299 = sst [smem:[#allocation28_spill]] %s2712_s28  ;;  %p2714_p7 = por %p280_p2, %p70_p10 }
  0x29   : > { %3298 = sst [smem:[#allocation27_spill]] %s3297_s26  ;;  %p2721_p9 = pnand %p2156_p6, %p66_p11 }
  0x2a   : > { %s3300_s29 = scalar_select %p2714_p7, 1, 0 }
  0x2b   : > { %s431_s25 = sand.u32 1, %s2557_s22   ;;  %s3303_s1 = sld [smem:[#allocation30_spill]] }
  0x2c   : > { %3301 = sst [smem:[#allocation29_spill]] %s3300_s29  ;;  %s434_s28 = scalar_lea.vmem [#allocation5], %s2719_s12 }
  0x2d   : > { %s441_s17 = sshll.u32 %s434_s28, 4  ;;  %s2731_s19 = scalar_lea.sflag [#allocation6], %s431_s25  ;;  %s442_s17 = int_to_ptr.vmem [resolvable:$true] %s441_s17 }
  0x2e   : > { %s3304_s4 = sld [smem:[#allocation32_spill]]  ;;  %s2562_s3 = smov [#allocation10]  }
  0x2f   : > { %s370_s14 = sshll.u32 %s2562_s3, 4  ;;  %s3305_s5 = sld [smem:[#allocation33_spill]]  ;;  %s371_s14 = int_to_ptr.vmem [resolvable:$true] %s370_s14 }
  0x30   : > { %s3306_s11 = smov 4   ;;  %s3307_s25 = smov 64  }
  0x31   : > { %s437_s15 = scalar_lea.hbm %s3303_s1, %s2553_s21  ;;  %s1644_s29 = sshll.u32 %s2719_s12, 8 }
  0x32   : > { %s439_s16 = sshll.u32 %s437_s15, 4  ;;  %s2565_s9 = smov 8   ;;  %s440_s16 = int_to_ptr.hbm [resolvable:$true] %s439_s16 }
  0x33   : > { %2139 = dma.hbm_to_vmem [thread:$0]  (!%p2721_p9), %s440_s16, 16, %s442_s17, %s2731_s19  }
  0x34   : > { %s368_s22 = sshll.u32 %s3304_s4, 4  ;;  %s2563_s17 = smov [#allocation11]   ;;  %s369_s22 = int_to_ptr.hbm [resolvable:$true] %s368_s22 }
  0x35   : > { %s382_s1 = sshll.u32 %s3305_s5, 4  ;;  %s384_s26 = sshll.u32 %s2563_s17, 4  ;;  %s383_s1 = int_to_ptr.hbm [resolvable:$true] %s382_s1  ;;  %s385_s26 = int_to_ptr.vmem [resolvable:$true] %s384_s26 }
  0x36   : > { %2129 = dma.hbm_to_vmem [thread:$0]  (!%p2675_p5), %s369_s22, 1024, %s371_s14, [#allocation9], %s3307_s25, %s3307_s25, %s3306_s11  }
  0x37   : > { %2132 = dma.hbm_to_vmem [thread:$0]  (!%p2675_p5), %s383_s1, 1024, %s385_s26, [#allocation12], %s3307_s25, %s3307_s25, %s3306_s11  }
  0x38   : > { %s1762_s16 = sshll.u32 %s2553_s21, 8  ;;  %s411_s22 = scalar_lea.vmem [#allocation2], %s1644_s29 }
  0x39   : > { %s418_s28 = scalar_lea.hbm %s3254_s0, %s1762_s16  ;;  %s421_s14 = sshll.u32 %s411_s22, 4  ;;  %s422_s14 = int_to_ptr.vmem [resolvable:$true] %s421_s14 }
  0x3a   : > { %s419_s4 = sshll.u32 %s418_s28, 4  ;;  %s408_s17 = scalar_lea.sflag [#allocation3], %s2719_s12  ;;  %s420_s4 = int_to_ptr.hbm [resolvable:$true] %s419_s4 }
  0x3b   : > { %s2564_s5 = smov 128   ;;  %s454_s1 = scalar_lea.hbm %s3256_s2, %s2553_s21 }
  0x3c   : > { %2136 = dma.hbm_to_vmem [thread:$0]  (!%p2721_p9), %s420_s4, 4096, %s422_s14, %s408_s17, %s2564_s5, %s2564_s5, %s2565_s9  }
  0x3d   : > { %s451_s11 = scalar_lea.vmem [#allocation7], %s2719_s12  ;;  %s456_s26 = sshll.u32 %s454_s1, 4  ;;  %s457_s26 = int_to_ptr.hbm [resolvable:$true] %s456_s26 }
  0x3e   : > { %s458_s25 = sshll.u32 %s451_s11, 4  ;;  %467 = sbr.rel (%p2667_p3) target bundleno = 457 (0x1c9), region = 56  ;;  %s459_s25 = int_to_ptr.vmem [resolvable:$true] %s458_s25 }
  0x3f   : > { %2142 = dma.hbm_to_vmem [thread:$0]  (!%p2721_p9), %s457_s26, 16, %s459_s25, %s2731_s19  }
  0x40   : > { %s2771_s29 = sand.u32 (!%p2667_p3), 1, %s2541_s18  }
  0x41   : > { %s1648_s4 = sshll.u32 (!%p2667_p3), %s2771_s29, 8  ;;  %s470_s5 = scalar_lea.sflag (!%p2667_p3), [#allocation3], %s2771_s29 }
  0x42   : > { %s2775_s9 = scalar_lea.vmem (!%p2667_p3), [#allocation2], %s1648_s4 }
  0x43   : > { %2512 = dma.done.wait (%p2697_p12), %s470_s5, 4096  }
  0x44   : > { %2514 = vsyncadd (%p2697_p12), %s470_s5, 4294963200  ;;  %s479_s10 = sand.u32 1, %s2659_s23   ;;  %s482_s27 = scalar_lea.vmem [#allocation5], %s2771_s29 }
  0x45   : > { %s480_s19 = scalar_lea.sflag [#allocation6], %s479_s10 }
  0x46   : > { %2516 = dma.done.wait (%p2697_p12), %s480_s19, 32  }
  0x47   : > { %2518 = vsyncadd (%p2697_p12), %s480_s19, 4294967264  ;;  %s491_s12 = scalar_lea.vmem [#allocation7], %s2771_s29 }
  0x48   : > { %2520 = dma.done.wait (%p71_p1), [#allocation9], 2048  }
  0x49   : > { %2522 = vsyncadd (%p71_p1), [#allocation9], 4294965248 }
  0x4a   : > { %2524 = dma.done.wait (%p71_p1), [#allocation12], 1024  }
  0x4b   : > { %2526 = vsyncadd (%p71_p1), [#allocation12], 4294966272  ;;  %v1770_v0 = vld [vmem:[#allocation8 + $0x38] sm:$0xff]  ;;  %v1769_v3 = vld [vmem:[#allocation8 + $0x30] sm:$0xff]  ;;  %s2966_s15 = sshll.u32 %s2771_s29, 7  ;;  %s1787_s1 = sshll.u32 %s2549_s20, 7 }
  0x4c   : > { %v2798_v1 = vld [vmem:[#allocation10 + $0x38] sm:$0xff]  ;;  %756 = vmatpush.bf16.msra.mxu0 %v1770_v0  ;;  %2075 = vmatpush.bf16.msra.mxu3 %v1770_v0  ;;  %v2804_v4 = vld [vmem:[#allocation10 + $0x30] sm:$0xff]  ;;  %v1768_v6 = vld [vmem:[#allocation8 + $0x28] sm:$0xff]  ;;  %s2982_s14 = scalar_lea.vmem [#allocation13], %s2966_s15  ;;  %s2986_s17 = scalar_lea.vmem [#allocation14], %s2966_s15 }
  0x4d   : > { %v2800_v2 = vld [vmem:[#allocation11 + $0x38] sm:$0xff]  ;;  %977 = vmatpush.bf16.msra.mxu1 %v2798_v1  ;;  %v2806_v5 = vld [vmem:[#allocation11 + $0x30] sm:$0xff]  ;;  %v2810_v7 = vld [vmem:[#allocation10 + $0x28] sm:$0xff]  ;;  %s2996_s30 = scalar_lea.vmem [#allocation16], %s2966_s15  ;;  %s3308_s26 = sld [smem:[#allocation35_spill]] }
  0x4e   : > { %1198 = vmatpush.bf16.msra.mxu2 %v2800_v2  ;;  %v2812_v8 = vld [vmem:[#allocation11 + $0x28] sm:$0xff]  ;;  %v1767_v9 = vld [vmem:[#allocation8 + $0x20] sm:$0xff]  ;;  %v1766_v12 = vld [vmem:[#allocation8 + $0x18] sm:$0xff]  ;;  %s1395_s5 = sshll.u32 %s2986_s17, 4  ;;  %s1376_s20 = sshll.u32 %s2982_s14, 4  ;;  %s3150_s5 = int_to_ptr.vmem [resolvable:$true] %s1395_s5  ;;  %s3157_s20 = int_to_ptr.vmem [resolvable:$true] %s1376_s20 }
  0x4f   : > { %v2816_v10 = vld [vmem:[#allocation10 + $0x20] sm:$0xff]  ;;  %v2822_v13 = vld [vmem:[#allocation10 + $0x18] sm:$0xff]  ;;  %v1765_v15 = vld [vmem:[#allocation8 + $0x10] sm:$0xff]  ;;  %s3310_s15 = sld [smem:[#allocation36_spill]]  ;;  %s1414_s25 = sshll.u32 %s2996_s30, 4  ;;  %s1415_s25 = int_to_ptr.vmem [resolvable:$true] %s1414_s25 }
  0x50   : > { %757 = vmatpush.bf16.msra.mxu0 %v1769_v3  ;;  %2076 = vmatpush.bf16.msra.mxu3 %v1769_v3  ;;  %v2818_v11 = vld [vmem:[#allocation11 + $0x20] sm:$0xff]  ;;  %v2824_v14 = vld [vmem:[#allocation11 + $0x18] sm:$0xff]  ;;  %v1773_v21 = vld [vmem:[#allocation10 + $0x10] sm:$0xff] }
  0x51   : > { %978 = vmatpush.bf16.msra.mxu1 %v2804_v4  ;;  %v568_v16 = vld [vmem:[%s2775_s9] sm:$0xff]  ;;  %v569_v18 = vld [vmem:[%s2775_s9 + $0x8] sm:$0xff]  ;;  %v2836_v22 = vld [vmem:[#allocation11 + $0x10] sm:$0xff] }
  0x52   : > { %1199 = vmatpush.bf16.msra.mxu2 %v2806_v5  ;;  %v2829_v17 = vld [vmem:[%s482_s27] ss:$0 sm:$0xff]  ;;  %v593_v20 = vld [vmem:[%s2775_s9 + $0xc8] sm:$0xff]  ;;  %v570_v40 = vld [vmem:[%s2775_s9 + $0x10] sm:$0xff]  ;;  %s3309_s27 = sld [smem:[#allocation34_spill]] }
  0x53   : > { %v592_v19 = vld [vmem:[%s2775_s9 + $0xc0] sm:$0xff]  ;;  %v604_v23 = vmul.f32 %v2829_v17, %v568_v16  ;;  %v605_v24 = vmul.f32 %v2829_v17, %v569_v18  ;;  %v629_v27 = vmul.f32 %v2829_v17, %v593_v20  ;;  %v1764_v28 = vld [vmem:[#allocation8 + $0x8] sm:$0xff]  ;;  %v571_v41 = vld [vmem:[%s2775_s9 + $0x18] sm:$0xff]  ;;  %v606_v44 = vmul.f32 %v2829_v17, %v570_v40  ;;  %s1394_s4 = scalar_lea.hbm %s3308_s26, %s1787_s1  ;;  %s2423_s19 = scalar_lea.hbm %s3308_s26, 256 }
  0x54   : > { %758 = vmatpush.bf16.msra.mxu0 %v1768_v6  ;;  %2077 = vmatpush.bf16.msra.mxu3 %v1768_v6  ;;  %v2842_v25 = vld [vmem:[%s491_s12] ss:$0 sm:$0xff]  ;;  %v628_v26 = vmul.f32 %v2829_v17, %v592_v19  ;;  %v1772_v29 = vld [vmem:[#allocation10 + $0x8] sm:$0xff]  ;;  %v1763_v35 = vld [vmem:[#allocation8] sm:$0xff]  ;;  %v607_v45 = vmul.f32 %v2829_v17, %v571_v41  ;;  %s3141_s13 = sshll.u32 %s1394_s4, 4  ;;  %s3168_s4 = scalar_lea.sflag [#allocation15], %s479_s10  ;;  %s1398_s13 = int_to_ptr.hbm [resolvable:$true] %s3141_s13 }
  0x55   : > { %979 = vmatpush.bf16.msra.mxu1 %v2810_v7  ;;  %v2847_v30 = vld [vmem:[#allocation11 + $0x8] sm:$0xff]  ;;  %v640_v31 = vadd.f32 %v2842_v25, %v604_v23  ;;  %v641_v32 = vadd.f32 %v2842_v25, %v605_v24  ;;  %v665_v34 = vadd.f32 %v2842_v25, %v629_v27  ;;  %v1771_v36 = vld [vmem:[#allocation10] sm:$0xff]  ;;  %v595_v43 = vld [vmem:[%s2775_s9 + $0xd8] sm:$0xff]  ;;  %v642_v48 = vadd.f32 %v2842_v25, %v606_v44  ;;  %s1413_s28 = scalar_lea.hbm %s3310_s15, %s1787_s1 }
  0x56   : > { %1200 = vmatpush.bf16.msra.mxu2 %v2812_v8  ;;  %v664_v33 = vadd.f32 %v2842_v25, %v628_v26  ;;  %v2854_v37 = vld [vmem:[#allocation11] sm:$0xff]  ;;  %v594_v42 = vld [vmem:[%s2775_s9 + $0xd0] sm:$0xff]  ;;  %v631_v47 = vmul.f32 %v2829_v17, %v595_v43  ;;  %v643_v49 = vadd.f32 %v2842_v25, %v607_v45  ;;  %v583_v43 = vld [vmem:[%s2775_s9 + $0x78] sm:$0xff]  ;;  %s3161_s11 = sshll.u32 %s1413_s28, 4  ;;  %s1417_s11 = int_to_ptr.hbm [resolvable:$true] %s3161_s11 }
  0x57   : > { %v672_v38 = vpack.c.bf16 %v641_v32, %v640_v31  ;;  %v630_v46 = vmul.f32 %v2829_v17, %v594_v42  ;;  %v572_v54 = vld [vmem:[%s2775_s9 + $0x20] sm:$0xff]  ;;  %v573_v55 = vld [vmem:[%s2775_s9 + $0x28] sm:$0xff]  ;;  %v574_v6 = vld [vmem:[%s2775_s9 + $0x30] sm:$0xff]  ;;  %v619_v45 = vmul.f32 %v2829_v17, %v583_v43 }
  0x58   : > { %759 = vmatpush.bf16.msra.mxu0 %v1767_v9  ;;  %2078 = vmatpush.bf16.msra.mxu3 %v1767_v9  ;;  %v2856_v39 = vpack.c.bf16 %v665_v34, %v664_v33  ;;  %v667_v51 = vadd.f32 %v2842_v25, %v631_v47  ;;  %v673_v52 = vpack.c.bf16 %v643_v49, %v642_v48  ;;  %v596_v56 = vld [vmem:[%s2775_s9 + $0xe0] sm:$0xff]  ;;  %v597_v57 = vld [vmem:[%s2775_s9 + $0xe8] sm:$0xff]  ;;  %v598_v9 = vld [vmem:[%s2775_s9 + $0xf0] sm:$0xff]  ;;  %s1375_s12 = scalar_lea.hbm %s3309_s27, %s1787_s1  ;;  %s2417_s1 = sshra.s32 %s1398_s13, 4  ;;  %s2418_s1 = int_to_ptr.hbm [resolvable:$true] %s2417_s1 }
  0x59   : > { %980 = vmatpush.bf16.msra.mxu1 %v2816_v10  ;;  %v666_v50 = vadd.f32 %v2842_v25, %v630_v46  ;;  %v608_v58 = vmul.f32 %v2829_v17, %v572_v54  ;;  %v609_v59 = vmul.f32 %v2829_v17, %v573_v55  ;;  %v632_v60 = vmul.f32 %v2829_v17, %v596_v56  ;;  %v577_v23 = vld [vmem:[%s2775_s9 + $0x48] sm:$0xff]  ;;  %v580_v34 = vld [vmem:[%s2775_s9 + $0x60] sm:$0xff]  ;;  %v582_v42 = vld [vmem:[%s2775_s9 + $0x70] sm:$0xff]  ;;  %s3148_s24 = sshll.u32 %s1375_s12, 4  ;;  %p2424_p6 = scmp.lt.s32.totalorder %s2418_s1, %s3308_s26  ;;  %s1379_s24 = int_to_ptr.hbm [resolvable:$true] %s3148_s24 }
  0x5a   : > { %1201 = vmatpush.bf16.msra.mxu2 %v2818_v11  ;;  %v633_v61 = vmul.f32 %v2829_v17, %v597_v57  ;;  %v618_v44 = vmul.f32 %v2829_v17, %v582_v42  ;;  %v655_v47 = vadd.f32 %v2842_v25, %v619_v45  ;;  %v584_v49 = vld [vmem:[%s2775_s9 + $0x80] sm:$0xff] }
  0x5b   : > { %v2876_v53 = vpack.c.bf16 %v667_v51, %v666_v50  ;;  %v644_v62 = vadd.f32 %v2842_v25, %v608_v58  ;;  %v645_v63 = vadd.f32 %v2842_v25, %v609_v59  ;;  %v668_v0 = vadd.f32 %v2842_v25, %v632_v60  ;;  %v585_v50 = vld [vmem:[%s2775_s9 + $0x88] sm:$0xff]  ;;  %v586_v59 = vld [vmem:[%s2775_s9 + $0x90] sm:$0xff]  ;;  %v587_v60 = vld [vmem:[%s2775_s9 + $0x98] sm:$0xff] }
  0x5c   : > { %760 = vmatpush.bf16.msra.mxu0 %v1766_v12  ;;  %2079 = vmatpush.bf16.msra.mxu3 %v1766_v12  ;;  %v610_v12 = vmul.f32 %v2829_v17, %v574_v6  ;;  %v654_v46 = vadd.f32 %v2842_v25, %v618_v44  ;;  %v620_v51 = vmul.f32 %v2829_v17, %v584_v49 }
  0x5d   : > { %981 = vmatpush.bf16.msra.mxu1 %v2822_v13  ;;  %v674_v3 = vpack.c.bf16 %v645_v63, %v644_v62  ;;  %v2963_v62 = vld [vmem:[%s3261_s7] ss:$0 sm:$0xff] }
  0x5e   : > { %1202 = vmatpush.bf16.msra.mxu2 %v2824_v14  ;;  %v646_v16 = vadd.f32 %v2842_v25, %v610_v12  ;;  %v679_v48 = vpack.c.bf16 %v655_v47, %v654_v46  ;;  %v656_v54 = vadd.f32 %v2842_v25, %v620_v51 }
  0x60   : > { %761 = vmatpush.bf16.msra.mxu0 %v1765_v15  ;;  %2080 = vmatpush.bf16.msra.mxu3 %v1765_v15  ;;  %v634_v15 = vmul.f32 %v2829_v17, %v598_v9 }
  0x61   : > { %982 = vmatpush.bf16.msra.mxu1 %v1773_v21 }
  0x62   : > { %1203 = vmatpush.bf16.msra.mxu2 %v2836_v22  ;;  %v670_v19 = vadd.f32 %v2842_v25, %v634_v15 }
  0x64   : > { %762 = vmatpush.bf16.msra.mxu0 %v1764_v28  ;;  %2081 = vmatpush.bf16.msra.mxu3 %v1764_v28  ;;  %v579_v28 = vld [vmem:[%s2775_s9 + $0x58] sm:$0xff] }
  0x65   : > { %983 = vmatpush.bf16.msra.mxu1 %v1772_v29 }
  0x66   : > { %1204 = vmatpush.bf16.msra.mxu2 %v2847_v30 }
  0x68   : > { %763 = vmatpush.bf16.msra.mxu0 %v1763_v35  ;;  %2082 = vmatpush.bf16.msra.mxu3 %v1763_v35  ;;  %v581_v35 = vld [vmem:[%s2775_s9 + $0x68] sm:$0xff] }
  0x69   : > { %984 = vmatpush.bf16.msra.mxu1 %v1771_v36 }
  0x6a   : > { %1205 = vmatpush.bf16.msra.mxu2 %v2854_v37 }
  0x6b   : > { %764 = vmatmul.bf16.vlgmr.msra.gmra.mxu0 %v672_v38  ;;  %824 = vmatmul.bf16.vlgmr.msra.gmra.mxu3 %v2856_v39 }
  0x6c   : > { %2083 = vmatpush.bf16.msrb.mxu3 %v2798_v1  ;;  %985 = vmatmul.bf16.vlgmr.msra.gmra.mxu1 %v672_v38  ;;  %v669_v1 = vadd.f32 %v2842_v25, %v633_v61  ;;  %v2958_v61 = vld [vmem:[%s3260_s6] ss:$0 sm:$0xff] }
  0x6d   : > { %1206 = vmatmul.bf16.vlgmr.msra.gmra.mxu2 %v672_v38 }
  0x70   : > { %2084 = vmatpush.bf16.msrb.mxu3 %v2804_v4  ;;  %v2892_v4 = vpack.c.bf16 %v669_v1, %v668_v0  ;;  %v623_v1 = vmul.f32 %v2829_v17, %v587_v60 }
  0x74   : > { %2085 = vmatpush.bf16.msrb.mxu3 %v2810_v7  ;;  %v575_v7 = vld [vmem:[%s2775_s9 + $0x38] sm:$0xff] }
  0x78   : > { %2086 = vmatpush.bf16.msrb.mxu3 %v2816_v10  ;;  %v599_v10 = vld [vmem:[%s2775_s9 + $0xf8] sm:$0xff] }
  0x7b   : > { %769 = vmatmul.bf16.gmra.mxu0 %v673_v52  ;;  %829 = vmatmul.bf16.gmra.mxu3 %v2876_v53 }
  0x7c   : > { %2087 = vmatpush.bf16.msrb.mxu3 %v2822_v13  ;;  %990 = vmatmul.bf16.gmra.mxu1 %v673_v52  ;;  %v611_v13 = vmul.f32 %v2829_v17, %v575_v7 }
  0x7d   : > { %1211 = vmatmul.bf16.gmra.mxu2 %v673_v52  ;;  %v621_v52 = vmul.f32 %v2829_v17, %v585_v50 }
  0x7e   : > { %v647_v18 = vadd.f32 %v2842_v25, %v611_v13 }
  0x7f   : > { %v657_v55 = vadd.f32 %v2842_v25, %v621_v52 }
  0x80   : > { %2088 = vmatpush.bf16.msrb.mxu3 %v1773_v21  ;;  %v675_v20 = vpack.c.bf16 %v647_v18, %v646_v16  ;;  %v2979_v16 = vld [vmem:[%s3262_s8] ss:$0 sm:$0xff] }
  0x81   : > { %v680_v56 = vpack.c.bf16 %v657_v55, %v656_v54 }
  0x84   : > { %2089 = vmatpush.bf16.msrb.mxu3 %v1772_v29 }
  0x88   : > { %2090 = vmatpush.bf16.msrb.mxu3 %v1771_v36  ;;  %v616_v36 = vmul.f32 %v2829_v17, %v580_v34 }
  0x8a   : > { %v652_v38 = vadd.f32 %v2842_v25, %v616_v36 }
  0x8b   : > { %774 = vmatmul.bf16.gmra.mxu0 %v674_v3  ;;  %834 = vmatmul.bf16.gmra.mxu3 %v2892_v4 }
  0x8c   : > { %2091 = vmatpush.bf16.msra.mxu3 %v2800_v2  ;;  %995 = vmatmul.bf16.gmra.mxu1 %v674_v3  ;;  %v635_v2 = vmul.f32 %v2829_v17, %v599_v10 }
  0x8d   : > { %1216 = vmatmul.bf16.gmra.mxu2 %v674_v3 }
  0x90   : > { %2092 = vmatpush.bf16.msra.mxu3 %v2806_v5  ;;  %v671_v5 = vadd.f32 %v2842_v25, %v635_v2  ;;  %v659_v2 = vadd.f32 %v2842_v25, %v623_v1 }
  0x92   : > { %v2911_v21 = vpack.c.bf16 %v671_v5, %v670_v19 }
  0x94   : > { %2093 = vmatpush.bf16.msra.mxu3 %v2812_v8  ;;  %v576_v8 = vld [vmem:[%s2775_s9 + $0x40] sm:$0xff] }
  0x95   : > { %v612_v24 = vmul.f32 %v2829_v17, %v576_v8 }
  0x97   : > { %v648_v26 = vadd.f32 %v2842_v25, %v612_v24 }
  0x98   : > { %2094 = vmatpush.bf16.msra.mxu3 %v2818_v11  ;;  %v613_v11 = vmul.f32 %v2829_v17, %v577_v23 }
  0x9b   : > { %779 = vmatmul.bf16.gmra.mxu0 %v675_v20  ;;  %839 = vmatmul.bf16.gmra.mxu3 %v2911_v21 }
  0x9c   : > { %2095 = vmatpush.bf16.msra.mxu3 %v2824_v14  ;;  %1000 = vmatmul.bf16.gmra.mxu1 %v675_v20  ;;  %v649_v14 = vadd.f32 %v2842_v25, %v613_v11 }
  0x9d   : > { %1221 = vmatmul.bf16.gmra.mxu2 %v675_v20 }
  0x9e   : > { %v676_v27 = vpack.c.bf16 %v649_v14, %v648_v26 }
  0xa0   : > { %2096 = vmatpush.bf16.msra.mxu3 %v2836_v22  ;;  %v578_v22 = vld [vmem:[%s2775_s9 + $0x50] sm:$0xff] }
  0xa1   : > { %v614_v29 = vmul.f32 %v2829_v17, %v578_v22 }
  0xa3   : > { %v650_v31 = vadd.f32 %v2842_v25, %v614_v29  ;;  %v589_v29 = vld [vmem:[%s2775_s9 + $0xa8] sm:$0xff] }
  0xa4   : > { %2097 = vmatpush.bf16.msra.mxu3 %v2847_v30  ;;  %v615_v30 = vmul.f32 %v2829_v17, %v579_v28  ;;  %v588_v28 = vld [vmem:[%s2775_s9 + $0xa0] sm:$0xff] }
  0xa6   : > { %v651_v32 = vadd.f32 %v2842_v25, %v615_v30 }
  0xa8   : > { %2098 = vmatpush.bf16.msra.mxu3 %v2854_v37  ;;  %v677_v33 = vpack.c.bf16 %v651_v32, %v650_v31  ;;  %v617_v37 = vmul.f32 %v2829_v17, %v581_v35  ;;  %v624_v32 = vmul.f32 %v2829_v17, %v588_v28 }
  0xaa   : > { %v653_v40 = vadd.f32 %v2842_v25, %v617_v37 }
  0xab   : > { %784 = vmatmul.bf16.gmra.mxu0 %v676_v27  ;;  %1045 = vmatmul.bf16.vlgmr.msrb.gmra.mxu3 %v2856_v39 }
  0xac   : > { %1005 = vmatmul.bf16.gmra.mxu1 %v676_v27  ;;  %v678_v41 = vpack.c.bf16 %v653_v40, %v652_v38 }
  0xad   : > { %1226 = vmatmul.bf16.gmra.mxu2 %v676_v27 }
  0xbb   : > { %789 = vmatmul.bf16.gmra.mxu0 %v677_v33  ;;  %1050 = vmatmul.bf16.gmra.mxu3 %v2876_v53 }
  0xbc   : > { %1010 = vmatmul.bf16.gmra.mxu1 %v677_v33 }
  0xbd   : > { %1231 = vmatmul.bf16.gmra.mxu2 %v677_v33  ;;  %v625_v33 = vmul.f32 %v2829_v17, %v589_v29 }
  0xbf   : > { %v661_v42 = vadd.f32 %v2842_v25, %v625_v33 }
  0xcb   : > { %794 = vmatmul.bf16.gmra.mxu0 %v678_v41  ;;  %1055 = vmatmul.bf16.gmra.mxu3 %v2892_v4 }
  0xcc   : > { %1015 = vmatmul.bf16.gmra.mxu1 %v678_v41 }
  0xcd   : > { %1236 = vmatmul.bf16.gmra.mxu2 %v678_v41  ;;  %v660_v41 = vadd.f32 %v2842_v25, %v624_v32 }
  0xdb   : > { %799 = vmatmul.bf16.gmra.mxu0 %v679_v48  ;;  %1060 = vmatmul.bf16.gmra.mxu3 %v2911_v21 }
  0xdc   : > { %1020 = vmatmul.bf16.gmra.mxu1 %v679_v48 }
  0xdd   : > { %1241 = vmatmul.bf16.gmra.mxu2 %v679_v48  ;;  %v682_v48 = vpack.c.bf16 %v661_v42, %v660_v41 }
  0xe8   : > { %v765_v57 = vpop.f32.mrf.mxu0 }
  0xe9   : > { %v986_v58 = vpop.f32.mrf.mxu1  ;;  %v766_v6 = vadd.f32 %v2958_v61, %v765_v57  ;;  %v591_v57 = vld [vmem:[%s2775_s9 + $0xb8] sm:$0xff] }
  0xea   : > { %v987_v10 = vadd.f32 %v2963_v62, %v986_v58 }
  0xeb   : > { %804 = vmatmul.bf16.gmra.mxu0 %v680_v56  ;;  %1266 = vmatmul.bf16.vlgmr.msra.gmra.mxu3 %v2856_v39  ;;  %v622_v39 = vmul.f32 %v2829_v17, %v586_v59 }
  0xec   : > { %1025 = vmatmul.bf16.gmra.mxu1 %v680_v56 }
  0xed   : > { %1246 = vmatmul.bf16.gmra.mxu2 %v680_v56  ;;  %v658_v15 = vadd.f32 %v2842_v25, %v622_v39  ;;  %v590_v56 = vld [vmem:[%s2775_s9 + $0xb0] sm:$0xff] }
  0xee   : > { %v825_v63 = vpop.f32.mrf.mxu3  ;;  %v626_v60 = vmul.f32 %v2829_v17, %v590_v56 }
  0xef   : > { %v826_v5 = vadd.f32 %v2958_v61, %v825_v63  ;;  %v681_v23 = vpack.c.bf16 %v659_v2, %v658_v15  ;;  %v627_v63 = vmul.f32 %v2829_v17, %v591_v57 }
  0xf0   : > { %v1207_v0 = vpop.f32.mrf.mxu2  ;;  %v767_v3 = vpop.f32.mrf.mxu0 }
  0xf1   : > { %v768_v7 = vadd.f32 %v2958_v61, %v767_v3  ;;  %v988_v9 = vpop.f32.mrf.mxu1  ;;  %v1208_v24 = vadd.f32 %v2979_v16, %v1207_v0 }
  0xf2   : > { %v989_v12 = vadd.f32 %v2963_v62, %v988_v9  ;;  %v662_v9 = vadd.f32 %v2842_v25, %v626_v60 }
  0xf3   : > { %v1793_v13 = vpack.c.bf16 %v768_v7, %v766_v6 }
  0xf4   : > { %v1873_v18 = vpack.c.bf16 %v989_v12, %v987_v10  ;;  %v663_v10 = vadd.f32 %v2842_v25, %v627_v63 }
  0xf5   : > { %1794 = vst [vmem:[%s2982_s14] sm:$0xff] %v1793_v13  }
  0xf6   : > { %1874 = vst [vmem:[%s2986_s17] sm:$0xff] %v1873_v18   ;;  %v827_v19 = vpop.f32.mrf.mxu3  ;;  %v683_v18 = vpack.c.bf16 %v663_v10, %v662_v9 }
  0xf7   : > { %v828_v20 = vadd.f32 %v2958_v61, %v827_v19 }
  0xf8   : > { %v1209_v8 = vpop.f32.mrf.mxu2  ;;  %v770_v26 = vpop.f32.mrf.mxu0 }
  0xf9   : > { %v1210_v11 = vadd.f32 %v2979_v16, %v1209_v8  ;;  %v1853_v14 = vpack.c.bf16 %v828_v20, %v826_v5  ;;  %v991_v27 = vpop.f32.mrf.mxu1  ;;  %v771_v35 = vadd.f32 %v2958_v61, %v770_v26 }
  0xfa   : > { %v992_v37 = vadd.f32 %v2963_v62, %v991_v27 }
  0xfb   : > { %v1953_v22 = vpack.c.bf16 %v1210_v11, %v1208_v24  ;;  %2041 = vst [vmem:[%s2982_s14 + $0x60] sm:$0xff] %v1853_v14   ;;  %809 = vmatmul.bf16.gmra.mxu0 %v681_v23  ;;  %1271 = vmatmul.bf16.gmra.mxu3 %v2876_v53 }
  0xfc   : > { %1030 = vmatmul.bf16.gmra.mxu1 %v681_v23 }
  0xfd   : > { %1954 = vst [vmem:[%s2996_s30] sm:$0xff] %v1953_v22   ;;  %1251 = vmatmul.bf16.gmra.mxu2 %v681_v23 }
  0xfe   : > { %v830_v30 = vpop.f32.mrf.mxu3 }
  0xff   : > { %v831_v45 = vadd.f32 %v2958_v61, %v830_v30 }
 0x100   : > { %v1212_v31 = vpop.f32.mrf.mxu2  ;;  %v772_v34 = vpop.f32.mrf.mxu0 }
 0x101   : > { %v773_v53 = vadd.f32 %v2958_v61, %v772_v34  ;;  %v993_v36 = vpop.f32.mrf.mxu1  ;;  %v1213_v49 = vadd.f32 %v2979_v16, %v1212_v31 }
 0x102   : > { %v994_v38 = vadd.f32 %v2963_v62, %v993_v36 }
 0x103   : > { %v1798_v40 = vpack.c.bf16 %v773_v53, %v771_v35 }
 0x104   : > { %v1878_v43 = vpack.c.bf16 %v994_v38, %v992_v37 }
 0x105   : > { %2030 = vst [vmem:[%s2982_s14 + $0x8] sm:$0xff] %v1798_v40  }
 0x106   : > { %2045 = vst [vmem:[%s2986_s17 + $0x8] sm:$0xff] %v1878_v43   ;;  %v832_v44 = vpop.f32.mrf.mxu3 }
 0x107   : > { %v833_v46 = vadd.f32 %v2958_v61, %v832_v44 }
 0x108   : > { %v1214_v47 = vpop.f32.mrf.mxu2  ;;  %v775_v51 = vpop.f32.mrf.mxu0 }
 0x109   : > { %v1215_v50 = vadd.f32 %v2979_v16, %v1214_v47  ;;  %v1858_v52 = vpack.c.bf16 %v833_v46, %v831_v45  ;;  %v996_v54 = vpop.f32.mrf.mxu1  ;;  %v776_v39 = vadd.f32 %v2958_v61, %v775_v51 }
 0x10b   : > { %v1958_v55 = vpack.c.bf16 %v1215_v50, %v1213_v49  ;;  %2042 = vst [vmem:[%s2982_s14 + $0x68] sm:$0xff] %v1858_v52   ;;  %814 = vmatmul.bf16.gmra.mxu0 %v682_v48  ;;  %1276 = vmatmul.bf16.gmra.mxu3 %v2892_v4  ;;  %v997_v4 = vadd.f32 %v2963_v62, %v996_v54 }
 0x10c   : > { %1035 = vmatmul.bf16.gmra.mxu1 %v682_v48 }
 0x10d   : > { %2060 = vst [vmem:[%s2996_s30 + $0x8] sm:$0xff] %v1958_v55   ;;  %1256 = vmatmul.bf16.gmra.mxu2 %v682_v48 }
 0x10e   : > { %v835_v58 = vpop.f32.mrf.mxu3 }
 0x10f   : > { %v836_v13 = vadd.f32 %v2958_v61, %v835_v58 }
 0x110   : > { %v1217_v59 = vpop.f32.mrf.mxu2  ;;  %v777_v0 = vpop.f32.mrf.mxu0 }
 0x111   : > { %v778_v1 = vadd.f32 %v2958_v61, %v777_v0  ;;  %v998_v3 = vpop.f32.mrf.mxu1  ;;  %v1218_v19 = vadd.f32 %v2979_v16, %v1217_v59 }
 0x112   : > { %v999_v6 = vadd.f32 %v2963_v62, %v998_v3 }
 0x113   : > { %v1803_v7 = vpack.c.bf16 %v778_v1, %v776_v39 }
 0x114   : > { %v1883_v12 = vpack.c.bf16 %v999_v6, %v997_v4 }
 0x115   : > { %2031 = vst [vmem:[%s2982_s14 + $0x10] sm:$0xff] %v1803_v7  }
 0x116   : > { %2046 = vst [vmem:[%s2986_s17 + $0x10] sm:$0xff] %v1883_v12   ;;  %v837_v17 = vpop.f32.mrf.mxu3 }
 0x117   : > { %v838_v15 = vadd.f32 %v2958_v61, %v837_v17 }
 0x118   : > { %v1219_v2 = vpop.f32.mrf.mxu2  ;;  %v780_v20 = vpop.f32.mrf.mxu0 }
 0x119   : > { %v1220_v5 = vadd.f32 %v2979_v16, %v1219_v2  ;;  %v1863_v8 = vpack.c.bf16 %v838_v15, %v836_v13  ;;  %v1001_v23 = vpop.f32.mrf.mxu1  ;;  %v781_v14 = vadd.f32 %v2958_v61, %v780_v20 }
 0x11a   : > { %v1002_v28 = vadd.f32 %v2963_v62, %v1001_v23 }
 0x11b   : > { %v1963_v24 = vpack.c.bf16 %v1220_v5, %v1218_v19  ;;  %2043 = vst [vmem:[%s2982_s14 + $0x70] sm:$0xff] %v1863_v8   ;;  %819 = vmatmul.bf16.gmra.mxu0 %v683_v18  ;;  %1281 = vmatmul.bf16.gmra.mxu3 %v2911_v21 }
 0x11c   : > { %1040 = vmatmul.bf16.gmra.mxu1 %v683_v18 }
 0x11d   : > { %2061 = vst [vmem:[%s2996_s30 + $0x10] sm:$0xff] %v1963_v24   ;;  %1261 = vmatmul.bf16.gmra.mxu2 %v683_v18 }
 0x11e   : > { %v840_v25 = vpop.f32.mrf.mxu3 }
 0x11f   : > { %v841_v32 = vadd.f32 %v2958_v61, %v840_v25 }
 0x120   : > { %v1222_v11 = vpop.f32.mrf.mxu2  ;;  %v782_v26 = vpop.f32.mrf.mxu0 }
 0x121   : > { %v783_v27 = vadd.f32 %v2958_v61, %v782_v26  ;;  %v1003_v22 = vpop.f32.mrf.mxu1  ;;  %v1223_v35 = vadd.f32 %v2979_v16, %v1222_v11 }
 0x122   : > { %v1004_v29 = vadd.f32 %v2963_v62, %v1003_v22 }
 0x123   : > { %v1808_v30 = vpack.c.bf16 %v783_v27, %v781_v14 }
 0x124   : > { %v1888_v31 = vpack.c.bf16 %v1004_v29, %v1002_v28 }
 0x125   : > { %2032 = vst [vmem:[%s2982_s14 + $0x18] sm:$0xff] %v1808_v30  }
 0x126   : > { %2047 = vst [vmem:[%s2986_s17 + $0x18] sm:$0xff] %v1888_v31   ;;  %v842_v21 = vpop.f32.mrf.mxu3 }
 0x127   : > { %v843_v33 = vadd.f32 %v2958_v61, %v842_v21 }
 0x128   : > { %v1224_v34 = vpop.f32.mrf.mxu2  ;;  %v785_v36 = vpop.f32.mrf.mxu0 }
 0x129   : > { %v1225_v53 = vadd.f32 %v2979_v16, %v1224_v34  ;;  %v1868_v37 = vpack.c.bf16 %v843_v33, %v841_v32  ;;  %v1006_v38 = vpop.f32.mrf.mxu1  ;;  %v786_v44 = vadd.f32 %v2958_v61, %v785_v36 }
 0x12a   : > { %v1007_v47 = vadd.f32 %v2963_v62, %v1006_v38 }
 0x12b   : > { %v1968_v40 = vpack.c.bf16 %v1225_v53, %v1223_v35  ;;  %2044 = vst [vmem:[%s2982_s14 + $0x78] sm:$0xff] %v1868_v37  }
 0x12d   : > { %2062 = vst [vmem:[%s2996_s30 + $0x18] sm:$0xff] %v1968_v40  }
 0x12e   : > { %v1046_v41 = vpop.f32.mrf.mxu3 }
 0x12f   : > { %v1047_v52 = vadd.f32 %v2963_v62, %v1046_v41 }
 0x130   : > { %v1227_v42 = vpop.f32.mrf.mxu2  ;;  %v787_v43 = vpop.f32.mrf.mxu0 }
 0x131   : > { %v788_v45 = vadd.f32 %v2958_v61, %v787_v43  ;;  %v1008_v46 = vpop.f32.mrf.mxu1  ;;  %v1228_v56 = vadd.f32 %v2979_v16, %v1227_v42 }
 0x132   : > { %v1009_v48 = vadd.f32 %v2963_v62, %v1008_v46 }
 0x133   : > { %v1813_v49 = vpack.c.bf16 %v788_v45, %v786_v44 }
 0x134   : > { %v1893_v50 = vpack.c.bf16 %v1009_v48, %v1007_v47 }
 0x135   : > { %2033 = vst [vmem:[%s2982_s14 + $0x20] sm:$0xff] %v1813_v49  }
 0x136   : > { %2048 = vst [vmem:[%s2986_s17 + $0x20] sm:$0xff] %v1893_v50   ;;  %v1048_v51 = vpop.f32.mrf.mxu3 }
 0x137   : > { %v1049_v54 = vadd.f32 %v2963_v62, %v1048_v51 }
 0x138   : > { %v1229_v55 = vpop.f32.mrf.mxu2  ;;  %v790_v58 = vpop.f32.mrf.mxu0 }
 0x139   : > { %v1230_v57 = vadd.f32 %v2979_v16, %v1229_v55  ;;  %v1933_v59 = vpack.c.bf16 %v1049_v54, %v1047_v52  ;;  %v1011_v60 = vpop.f32.mrf.mxu1  ;;  %v791_v3 = vadd.f32 %v2958_v61, %v790_v58 }
 0x13a   : > { %v1012_v7 = vadd.f32 %v2963_v62, %v1011_v60 }
 0x13b   : > { %v1973_v63 = vpack.c.bf16 %v1230_v57, %v1228_v56  ;;  %2056 = vst [vmem:[%s2986_s17 + $0x60] sm:$0xff] %v1933_v59  }
 0x13d   : > { %2063 = vst [vmem:[%s2996_s30 + $0x20] sm:$0xff] %v1973_v63  }
 0x13e   : > { %v1051_v0 = vpop.f32.mrf.mxu3 }
 0x13f   : > { %v1052_v13 = vadd.f32 %v2963_v62, %v1051_v0 }
 0x140   : > { %v1232_v39 = vpop.f32.mrf.mxu2  ;;  %v792_v1 = vpop.f32.mrf.mxu0 }
 0x141   : > { %v793_v4 = vadd.f32 %v2958_v61, %v792_v1  ;;  %v1013_v6 = vpop.f32.mrf.mxu1  ;;  %v1233_v18 = vadd.f32 %v2979_v16, %v1232_v39 }
 0x142   : > { %v1014_v9 = vadd.f32 %v2963_v62, %v1013_v6 }
 0x143   : > { %v1818_v10 = vpack.c.bf16 %v793_v4, %v791_v3 }
 0x144   : > { %v1898_v12 = vpack.c.bf16 %v1014_v9, %v1012_v7 }
 0x145   : > { %2034 = vst [vmem:[%s2982_s14 + $0x28] sm:$0xff] %v1818_v10  }
 0x146   : > { %2049 = vst [vmem:[%s2986_s17 + $0x28] sm:$0xff] %v1898_v12   ;;  %v1053_v17 = vpop.f32.mrf.mxu3 }
 0x147   : > { %v1054_v15 = vadd.f32 %v2963_v62, %v1053_v17 }
 0x148   : > { %v1234_v2 = vpop.f32.mrf.mxu2  ;;  %v795_v5 = vpop.f32.mrf.mxu0 }
 0x149   : > { %v1235_v19 = vadd.f32 %v2979_v16, %v1234_v2  ;;  %v1938_v20 = vpack.c.bf16 %v1054_v15, %v1052_v13  ;;  %v1016_v8 = vpop.f32.mrf.mxu1  ;;  %v796_v26 = vadd.f32 %v2958_v61, %v795_v5 }
 0x14a   : > { %v1017_v22 = vadd.f32 %v2963_v62, %v1016_v8 }
 0x14b   : > { %v1978_v23 = vpack.c.bf16 %v1235_v19, %v1233_v18  ;;  %2057 = vst [vmem:[%s2986_s17 + $0x68] sm:$0xff] %v1938_v20  }
 0x14d   : > { %2064 = vst [vmem:[%s2996_s30 + $0x28] sm:$0xff] %v1978_v23  }
 0x14e   : > { %v1056_v24 = vpop.f32.mrf.mxu3 }
 0x14f   : > { %v1057_v21 = vadd.f32 %v2963_v62, %v1056_v24 }
 0x150   : > { %v1237_v25 = vpop.f32.mrf.mxu2  ;;  %v797_v11 = vpop.f32.mrf.mxu0 }
 0x151   : > { %v798_v14 = vadd.f32 %v2958_v61, %v797_v11  ;;  %v1018_v27 = vpop.f32.mrf.mxu1  ;;  %v1238_v34 = vadd.f32 %v2979_v16, %v1237_v25 }
 0x152   : > { %v1019_v28 = vadd.f32 %v2963_v62, %v1018_v27 }
 0x153   : > { %v1823_v29 = vpack.c.bf16 %v798_v14, %v796_v26 }
 0x154   : > { %v1903_v30 = vpack.c.bf16 %v1019_v28, %v1017_v22 }
 0x155   : > { %2035 = vst [vmem:[%s2982_s14 + $0x30] sm:$0xff] %v1823_v29  }
 0x156   : > { %2050 = vst [vmem:[%s2986_s17 + $0x30] sm:$0xff] %v1903_v30   ;;  %v1058_v31 = vpop.f32.mrf.mxu3 }
 0x157   : > { %v1059_v32 = vadd.f32 %v2963_v62, %v1058_v31 }
 0x158   : > { %v1239_v33 = vpop.f32.mrf.mxu2  ;;  %v800_v53 = vpop.f32.mrf.mxu0 }
 0x159   : > { %v1240_v35 = vadd.f32 %v2979_v16, %v1239_v33  ;;  %v1943_v36 = vpack.c.bf16 %v1059_v32, %v1057_v21  ;;  %v1021_v37 = vpop.f32.mrf.mxu1  ;;  %v801_v43 = vadd.f32 %v2958_v61, %v800_v53 }
 0x15a   : > { %v1022_v46 = vadd.f32 %v2963_v62, %v1021_v37 }
 0x15b   : > { %v1983_v38 = vpack.c.bf16 %v1240_v35, %v1238_v34  ;;  %2058 = vst [vmem:[%s2986_s17 + $0x70] sm:$0xff] %v1943_v36  }
 0x15d   : > { %2065 = vst [vmem:[%s2996_s30 + $0x30] sm:$0xff] %v1983_v38  }
 0x15e   : > { %v1061_v40 = vpop.f32.mrf.mxu3 }
 0x15f   : > { %v1062_v51 = vadd.f32 %v2963_v62, %v1061_v40 }
 0x160   : > { %v1242_v41 = vpop.f32.mrf.mxu2  ;;  %v802_v42 = vpop.f32.mrf.mxu0 }
 0x161   : > { %v803_v44 = vadd.f32 %v2958_v61, %v802_v42  ;;  %v1023_v45 = vpop.f32.mrf.mxu1  ;;  %v1243_v55 = vadd.f32 %v2979_v16, %v1242_v41 }
 0x162   : > { %v1024_v47 = vadd.f32 %v2963_v62, %v1023_v45 }
 0x163   : > { %v1828_v48 = vpack.c.bf16 %v803_v44, %v801_v43 }
 0x164   : > { %v1908_v49 = vpack.c.bf16 %v1024_v47, %v1022_v46 }
 0x165   : > { %2036 = vst [vmem:[%s2982_s14 + $0x38] sm:$0xff] %v1828_v48  }
 0x166   : > { %2051 = vst [vmem:[%s2986_s17 + $0x38] sm:$0xff] %v1908_v49   ;;  %v1063_v50 = vpop.f32.mrf.mxu3 }
 0x167   : > { %v1064_v52 = vadd.f32 %v2963_v62, %v1063_v50 }
 0x168   : > { %v1244_v54 = vpop.f32.mrf.mxu2  ;;  %v805_v57 = vpop.f32.mrf.mxu0 }
 0x169   : > { %v1245_v56 = vadd.f32 %v2979_v16, %v1244_v54  ;;  %v1948_v58 = vpack.c.bf16 %v1064_v52, %v1062_v51  ;;  %v1026_v59 = vpop.f32.mrf.mxu1  ;;  %v806_v1 = vadd.f32 %v2958_v61, %v805_v57 }
 0x16a   : > { %v1027_v6 = vadd.f32 %v2963_v62, %v1026_v59 }
 0x16b   : > { %v1988_v60 = vpack.c.bf16 %v1245_v56, %v1243_v55  ;;  %2059 = vst [vmem:[%s2986_s17 + $0x78] sm:$0xff] %v1948_v58  }
 0x16d   : > { %2066 = vst [vmem:[%s2996_s30 + $0x38] sm:$0xff] %v1988_v60  }
 0x16e   : > { %v1267_v63 = vpop.f32.mrf.mxu3 }
 0x16f   : > { %v1268_v17 = vadd.f32 %v2979_v16, %v1267_v63 }
 0x170   : > { %v1247_v0 = vpop.f32.mrf.mxu2  ;;  %v807_v39 = vpop.f32.mrf.mxu0 }
 0x171   : > { %v808_v3 = vadd.f32 %v2958_v61, %v807_v39  ;;  %v1028_v4 = vpop.f32.mrf.mxu1  ;;  %v1248_v2 = vadd.f32 %v2979_v16, %v1247_v0 }
 0x172   : > { %v1029_v7 = vadd.f32 %v2963_v62, %v1028_v4 }
 0x173   : > { %v1833_v9 = vpack.c.bf16 %v808_v3, %v806_v1 }
 0x174   : > { %v1913_v10 = vpack.c.bf16 %v1029_v7, %v1027_v6 }
 0x175   : > { %2037 = vst [vmem:[%s2982_s14 + $0x40] sm:$0xff] %v1833_v9  }
 0x176   : > { %2052 = vst [vmem:[%s2986_s17 + $0x40] sm:$0xff] %v1913_v10   ;;  %v1269_v12 = vpop.f32.mrf.mxu3 }
 0x177   : > { %v1270_v15 = vadd.f32 %v2979_v16, %v1269_v12 }
 0x178   : > { %v1249_v13 = vpop.f32.mrf.mxu2  ;;  %v810_v19 = vpop.f32.mrf.mxu0 }
 0x179   : > { %v1250_v18 = vadd.f32 %v2979_v16, %v1249_v13  ;;  %v2013_v5 = vpack.c.bf16 %v1270_v15, %v1268_v17  ;;  %v1031_v20 = vpop.f32.mrf.mxu1  ;;  %v811_v11 = vadd.f32 %v2958_v61, %v810_v19 }
 0x17a   : > { %v1032_v27 = vadd.f32 %v2963_v62, %v1031_v20 }
 0x17b   : > { %v1993_v8 = vpack.c.bf16 %v1250_v18, %v1248_v2  ;;  %2071 = vst [vmem:[%s2996_s30 + $0x60] sm:$0xff] %v2013_v5  }
 0x17d   : > { %2067 = vst [vmem:[%s2996_s30 + $0x40] sm:$0xff] %v1993_v8  }
 0x17e   : > { %v1272_v23 = vpop.f32.mrf.mxu3 }
 0x17f   : > { %v1273_v31 = vadd.f32 %v2979_v16, %v1272_v23 }
 0x180   : > { %v1252_v24 = vpop.f32.mrf.mxu2  ;;  %v812_v25 = vpop.f32.mrf.mxu0 }
 0x181   : > { %v813_v26 = vadd.f32 %v2958_v61, %v812_v25  ;;  %v1033_v14 = vpop.f32.mrf.mxu1  ;;  %v1253_v33 = vadd.f32 %v2979_v16, %v1252_v24 }
 0x182   : > { %v1034_v22 = vadd.f32 %v2963_v62, %v1033_v14 }
 0x183   : > { %v1838_v28 = vpack.c.bf16 %v813_v26, %v811_v11 }
 0x184   : > { %v1918_v29 = vpack.c.bf16 %v1034_v22, %v1032_v27 }
 0x185   : > { %2038 = vst [vmem:[%s2982_s14 + $0x48] sm:$0xff] %v1838_v28  }
 0x186   : > { %2053 = vst [vmem:[%s2986_s17 + $0x48] sm:$0xff] %v1918_v29   ;;  %v1274_v30 = vpop.f32.mrf.mxu3 }
 0x187   : > { %v1275_v32 = vadd.f32 %v2979_v16, %v1274_v30 }
 0x188   : > { %v1254_v21 = vpop.f32.mrf.mxu2  ;;  %v815_v35 = vpop.f32.mrf.mxu0 }
 0x189   : > { %v1255_v34 = vadd.f32 %v2979_v16, %v1254_v21  ;;  %v2018_v53 = vpack.c.bf16 %v1275_v32, %v1273_v31  ;;  %v1036_v36 = vpop.f32.mrf.mxu1  ;;  %v816_v42 = vadd.f32 %v2958_v61, %v815_v35 }
 0x18a   : > { %v1037_v45 = vadd.f32 %v2963_v62, %v1036_v36 }
 0x18b   : > { %v1998_v37 = vpack.c.bf16 %v1255_v34, %v1253_v33  ;;  %2072 = vst [vmem:[%s2996_s30 + $0x68] sm:$0xff] %v2018_v53  }
 0x18d   : > { %2068 = vst [vmem:[%s2996_s30 + $0x48] sm:$0xff] %v1998_v37  }
 0x18e   : > { %v1277_v38 = vpop.f32.mrf.mxu3 }
 0x18f   : > { %v1278_v50 = vadd.f32 %v2979_v16, %v1277_v38 }
 0x190   : > { %v1257_v40 = vpop.f32.mrf.mxu2  ;;  %v817_v41 = vpop.f32.mrf.mxu0 }
 0x191   : > { %v818_v43 = vadd.f32 %v2958_v61, %v817_v41  ;;  %v1038_v44 = vpop.f32.mrf.mxu1  ;;  %v1258_v54 = vadd.f32 %v2979_v16, %v1257_v40 }
 0x192   : > { %v1039_v46 = vadd.f32 %v2963_v62, %v1038_v44 }
 0x193   : > { %v1843_v47 = vpack.c.bf16 %v818_v43, %v816_v42 }
 0x194   : > { %v1923_v48 = vpack.c.bf16 %v1039_v46, %v1037_v45 }
 0x195   : > { %2039 = vst [vmem:[%s2982_s14 + $0x50] sm:$0xff] %v1843_v47  }
 0x196   : > { %2054 = vst [vmem:[%s2986_s17 + $0x50] sm:$0xff] %v1923_v48   ;;  %v1279_v49 = vpop.f32.mrf.mxu3 }
 0x197   : > { %v1280_v52 = vadd.f32 %v2979_v16, %v1279_v49 }
 0x198   : > { %v1259_v51 = vpop.f32.mrf.mxu2  ;;  %v820_v56 = vpop.f32.mrf.mxu0 }
 0x199   : > { %v1260_v55 = vadd.f32 %v2979_v16, %v1259_v51  ;;  %v2023_v57 = vpack.c.bf16 %v1280_v52, %v1278_v50  ;;  %v1041_v58 = vpop.f32.mrf.mxu1  ;;  %v821_v39 = vadd.f32 %v2958_v61, %v820_v56 }
 0x19a   : > { %v1042_v4 = vadd.f32 %v2963_v62, %v1041_v58 }
 0x19b   : > { %v2003_v59 = vpack.c.bf16 %v1260_v55, %v1258_v54  ;;  %2073 = vst [vmem:[%s2996_s30 + $0x70] sm:$0xff] %v2023_v57  }
 0x19d   : > { %2069 = vst [vmem:[%s2996_s30 + $0x50] sm:$0xff] %v2003_v59  }
 0x19e   : > { %v1282_v60 = vpop.f32.mrf.mxu3 }
 0x19f   : > { %v1283_v9 = vadd.f32 %v2979_v16, %v1282_v60 }
 0x1a0   : > { %v1262_v63 = vpop.f32.mrf.mxu2  ;;  %v822_v0 = vpop.f32.mrf.mxu0 }
 0x1a1   : > { %v823_v1 = vadd.f32 %v2958_v61, %v822_v0  ;;  %v1043_v3 = vpop.f32.mrf.mxu1 }
 0x1a2   : > { %v1044_v6 = vadd.f32 %v2963_v62, %v1043_v3 }
 0x1a3   : > { %v1848_v7 = vpack.c.bf16 %v823_v1, %v821_v39 }
 0x1a4   : > { %v1928_v61 = vpack.c.bf16 %v1044_v6, %v1042_v4 }
 0x1a5   : > { %2040 = vst [vmem:[%s2982_s14 + $0x58] sm:$0xff] %v1848_v7   ;;  %s2419_s14 = scalar_lea.hbm %s2418_s1, 128 }
 0x1a6   : > { %2055 = vst [vmem:[%s2986_s17 + $0x58] sm:$0xff] %v1928_v61   ;;  %v1284_v62 = vpop.f32.mrf.mxu3  ;;  %p2420_p1 = scmp.ne.s32.totalorder %s2418_s1, %s2419_s14  ;;  %p2425_p8 = scmp.lt.s32.totalorder %s2423_s19, %s2419_s14 }
 0x1a7   : > { %v1285_v12 = vadd.f32 %v2979_v16, %v1284_v62 }
 0x1a8   : > { %v1264_v10 = vpop.f32.mrf.mxu2  ;;  %p2421_p3 = pnand %p2420_p1, %p2706_p4  ;;  %p2426_p10 = por %p2425_p8, %p2424_p6 }
 0x1aa   : > { %p2422_p5 = pneg %p2421_p3 }
 0x1ac   : > { %p2427_p11 = pnand %p2426_p10, %p2422_p5 }
 0x1ae   : > { %2430 = shalt.err (!%p2427_p11)
}
 0x1af   : > { %s2566_s23 = smov 64   ;;  %s2567_s10 = smov 4   ;;  %v1263_v17 = vadd.f32 %v2979_v16, %v1262_v63  ;;  %v1265_v13 = vadd.f32 %v2979_v16, %v1264_v10 }
 0x1b0   : > { %2118 = dma.vmem_to_hbm [thread:$0]  (%p2706_p4), %s3150_s5, 2048, %s1398_s13, %s3168_s4, %s2566_s23, %s2566_s23, %s2567_s10  }
 0x1b1   : > { %s1352_s3 = scalar_lea.sflag [#allocation4], %s2771_s29  ;;  %s2445_s28 = sshra.s32 %s1379_s24, 4  ;;  %s2446_s28 = int_to_ptr.hbm [resolvable:$true] %s2445_s28 }
 0x1b2   : > { %s2447_s1 = scalar_lea.hbm %s2446_s28, 128  ;;  %s2451_s9 = scalar_lea.hbm %s3309_s27, 256 }
 0x1b3   : > { %p2448_p12 = scmp.ne.s32.totalorder %s2446_s28, %s2447_s1  ;;  %p2452_p2 = scmp.lt.s32.totalorder %s2446_s28, %s3309_s27 }
 0x1b4   : > { %p2453_p9 = scmp.lt.s32.totalorder %s2451_s9, %s2447_s1 }
 0x1b5   : > { %p2449_p13 = pnand %p2448_p12, %p2706_p4 }
 0x1b6   : > { %p2454_p1 = por %p2453_p9, %p2452_p2 }
 0x1b7   : > { %p2450_p0 = pneg %p2449_p13 }
 0x1b9   : > { %p2455_p3 = pnand %p2454_p1, %p2450_p0 }
 0x1bb   : > { %2458 = shalt.err (!%p2455_p3)
}
 0x1bc   : > { %2117 = dma.vmem_to_hbm [thread:$0]  (%p2706_p4), %s3157_s20, 2048, %s1379_s24, %s1352_s3, %s2566_s23, %s2566_s23, %s2567_s10   ;;  %v2028_v16 = vpack.c.bf16 %v1285_v12, %v1283_v9  ;;  %v2008_v15 = vpack.c.bf16 %v1265_v13, %v1263_v17 }
 0x1bd   : > { %s2473_s29 = sshra.s32 %s1417_s11, 4  ;;  %s2479_s28 = scalar_lea.hbm %s3310_s15, 256  ;;  %s2474_s29 = int_to_ptr.hbm [resolvable:$true] %s2473_s29 }
 0x1be   : > { %2074 = vst [vmem:[%s2996_s30 + $0x78] sm:$0xff] %v2028_v16   ;;  %s2475_s5 = scalar_lea.hbm %s2474_s29, 128  ;;  %p2480_p10 = scmp.lt.s32.totalorder %s2474_s29, %s3310_s15 }
 0x1bf   : > { %2070 = vst [vmem:[%s2996_s30 + $0x58] sm:$0xff] %v2008_v15   ;;  %p2476_p5 = scmp.ne.s32.totalorder %s2474_s29, %s2475_s5  ;;  %p2481_p11 = scmp.lt.s32.totalorder %s2479_s28, %s2475_s5 }
 0x1c1   : > { %p2477_p6 = pnand %p2476_p5, %p2706_p4  ;;  %p2482_p12 = por %p2481_p11, %p2480_p10 }
 0x1c3   : > { %p2478_p8 = pneg %p2477_p6 }
 0x1c5   : > { %p2483_p13 = pnand %p2482_p12, %p2478_p8 }
 0x1c7   : > { %2486 = shalt.err (!%p2483_p13)
}
 0x1c8   : > { %2119 = dma.vmem_to_hbm [thread:$0]  (%p2706_p4), %s1415_s25, 2048, %s1417_s11, %s3168_s4, %s2566_s23, %s2566_s23, %s2567_s10  }
 0x1c9 PF: > { %s3312_s30 = sld [smem:[#allocation23_spill]] }
 0x1ca   : > { %s3314_s3 = sld [smem:[#allocation25_spill]] }
 0x1cf   : > { %s1431_s14 = sand.u32 1, %s3312_s30  }
 0x1d0   : > { %p3315_p0 = scmp.ge.s32.totalorder %s3314_s3, 2  ;;  %s1432_s17 = scalar_lea.sflag [#allocation4], %s1431_s14 }
 0x1d2   : > { %p2144_p2 = pnand %p3315_p0, %p2714_p7 }
 0x1d4   : > { %p2145_p9 = pneg %p2144_p2 }
 0x1d6   : > { %2528 = dma.done.wait (%p2145_p9), %s1432_s17, 2048  }
 0x1d7   : > { %2530 = vsyncadd (%p2145_p9), %s1432_s17, 4294965248  ;;  %s3316_s9 = sadd.s32 4294967294, %s3314_s3  }
 0x1d8   : > { %s1441_s22 = sand.u32 1, %s3316_s9  }
 0x1d9   : > { %s1442_s19 = scalar_lea.sflag [#allocation15], %s1441_s22 }
 0x1da   : > { %2532 = dma.done.wait (%p2145_p9), %s1442_s19, 4096  }
 0x1db   : > { %2534 = vsyncadd (%p2145_p9), %s1442_s19, 4294963200  ;;  %s36_s22 = sadd.s32 1, %s3314_s3   ;;  %s3317_s11 = sld [smem:[#allocation24_spill]] }
 0x1dc   : > { %p33_p4 = scmp.ge.s32.totalorder %s36_s22, 4   ;;  %s3318_s19 = sld [smem:[#allocation28_spill]] }
 0x1dd   : > { %s3319_s25 = sld [smem:[#allocation26_spill]]  ;;  %s3320_s17 = smov %s2541_s18 }
 0x1de   : > { %s3322_s20 = smov %s2553_s21 }
 0x1df   :  { %35 = sbr.rel (!%p33_p4) target bundleno = 20 (0x14), region = 169 }
 0x1e1   : > { %s3321_s18 = smov %s3317_s11 }
 0x1e3   : > { %s3323_s21 = smov %s3319_s25 }
 0x1e4   :  { %1458 = vsyncpa [#allocation3], 1 }
 0x1e5   :  { %1460 = vsyncpa [#allocation3 + $0x1], 1 }
 0x1e6   :  { %1461 = vsyncpa [#allocation6], 1 }
 0x1e7   :  { %1463 = vsyncpa [#allocation6 + $0x1], 1 }
 0x1e8   :  { %1464 = vsyncpa [#allocation9], 1 }
 0x1e9   :  { %1465 = vsyncpa [#allocation12], 1 }
 0x1ea   :  { %1466 = vsyncpa [#allocation4], 1 }
 0x1eb   :  { %1468 = vsyncpa [#allocation4 + $0x1], 1 }
 0x1ec   :  { %1469 = vsyncpa [#allocation15], 1 }
 0x1ed   :  { %1471 = vsyncpa [#allocation15 + $0x1], 1 }

</bundles_post_ra>
